<compile_context>
chip_gen: v7x
topology: tpu7x:2x2x1
jax: 0.10.0
libtpu: 0.0.40
codegen_flags: <defaults>
</compile_context>

<pallas_src>
import functools

import jax
import jax.numpy as jnp
from jax.experimental import pallas as pl
from jax.experimental.pallas import tpu as pltpu


def _round_up(x, m):
    return (x + m - 1) // m * m


def _gpt2_embed_kernel(*refs, has_pos, tile, k_depth):
    """Gather `tile` word (+ position) embedding rows via pipelined DMAs, add, store.

    Ref order (has_pos=True):
      ids_smem, pos_smem, word_hbm, pos_hbm, out_ref, wbuf, pbuf, sems
    Ref order (has_pos=False):
      ids_smem, word_hbm, out_ref, wbuf, sems
    """
    if has_pos:
        ids_ref, pos_ref, word_hbm, pos_hbm, out_ref, wbuf, pbuf, sems = refs
    else:
        ids_ref, word_hbm, out_ref, wbuf, sems = refs
        pos_ref = pos_hbm = pbuf = None

    base = pl.program_id(0) * tile  # first token of this tile (flat index)

    def _issue(t):
        slot = t % k_depth
        wid = ids_ref[base + t]
        pltpu.make_async_copy(
            word_hbm.at[pl.ds(wid, 1), :], wbuf.at[pl.ds(t, 1), :],
            sems.at[0, slot]).start()
        if has_pos:
            pid = pos_ref[base + t]
            pltpu.make_async_copy(
                pos_hbm.at[pl.ds(pid, 1), :], pbuf.at[pl.ds(t, 1), :],
                sems.at[1, slot]).start()

    def _wait(t):
        slot = t % k_depth
        # Descriptor shapes match the issued (1, d) copies; only size/sem/dst matter.
        pltpu.make_async_copy(
            word_hbm.at[pl.ds(0, 1), :], wbuf.at[pl.ds(t, 1), :],
            sems.at[0, slot]).wait()
        if has_pos:
            pltpu.make_async_copy(
                pos_hbm.at[pl.ds(0, 1), :], pbuf.at[pl.ds(t, 1), :],
                sems.at[1, slot]).wait()

    # Prime the pipeline: k_depth row gathers in flight per table (static unroll).
    for t in range(k_depth):
        _issue(t)

    # Steady state: wait for row t, immediately issue row t + k_depth.
    t_main = tile - k_depth
    if t_main > 0:
        @pl.loop(0, t_main)
        def _(t):
            _wait(t)
            _issue(t + k_depth)

    # Drain the last k_depth outstanding gathers.
    @pl.loop(t_main, tile)
    def _(t):
        _wait(t)

    # One dense VPU add over the staged tile, one dense (T, d) store.
    acc = wbuf[...].astype(jnp.float32)
    if has_pos:
        acc = acc + pbuf[...].astype(jnp.float32)
    out_ref[...] = acc.astype(out_ref.dtype)


def gpt2_embeddings_forward(word_embeddings, position_embeddings, input_ids,
                            position_ids=None, combine_batch_seqlen_dim=False,
                            tile_tokens=256, dma_depth=8):
    """Forward pass of GPT2Embeddings.

    word_embeddings:     (vocab_size, embed_dim)
    position_embeddings: (max_position_embeddings, embed_dim) or None
    input_ids:           (batch, seqlen) integer
    position_ids:        (batch, seqlen) integer or None (-> arange(seqlen))
    """
    batch, seqlen = input_ids.shape
    n_tok = batch * seqlen
    vocab_size, d = word_embeddings.shape
    has_pos = position_embeddings is not None
    out_dtype = word_embeddings.dtype

    # Token tile per grid step: multiple of 8 (sublane), capped for VMEM.
    tile = max(8, min(int(tile_tokens), _round_up(n_tok, 8)))
    n_pad = _round_up(n_tok, tile)
    k_depth = int(min(dma_depth, tile))  # in-flight row DMAs per table

    # Clamp ids so a stray / padding id can never drive an out-of-bounds DMA.
    ids = jnp.clip(input_ids.reshape(n_tok).astype(jnp.int32), 0, vocab_size - 1)
    if n_pad != n_tok:
        ids = jnp.pad(ids, (0, n_pad - n_tok))

    scratch = [pltpu.VMEM((tile, d), word_embeddings.dtype)]
    if has_pos:
        n_pos = position_embeddings.shape[0]
        if position_ids is None:
            position_ids = jnp.broadcast_to(
                jnp.arange(seqlen, dtype=jnp.int32)[None, :], (batch, seqlen))
        pos = jnp.clip(position_ids.reshape(n_tok).astype(jnp.int32), 0, n_pos - 1)
        if n_pad != n_tok:
            pos = jnp.pad(pos, (0, n_pad - n_tok))
        scratch.append(pltpu.VMEM((tile, d), position_embeddings.dtype))
        out_index_map = lambda i, ids_r, pos_r: (i, 0)
        num_prefetch = 2
        in_specs = [pl.BlockSpec(memory_space=pl.ANY),
                    pl.BlockSpec(memory_space=pl.ANY)]
    else:
        out_index_map = lambda i, ids_r: (i, 0)
        num_prefetch = 1
        in_specs = [pl.BlockSpec(memory_space=pl.ANY)]
    scratch.append(pltpu.SemaphoreType.DMA((2 if has_pos else 1, k_depth)))

    kernel = functools.partial(_gpt2_embed_kernel, has_pos=has_pos,
                               tile=tile, k_depth=k_depth)

    call = pl.pallas_call(
        kernel,
        out_shape=jax.ShapeDtypeStruct((n_pad, d), out_dtype),
        grid_spec=pltpu.PrefetchScalarGridSpec(
            num_scalar_prefetch=num_prefetch,
            grid=(n_pad // tile,),
            in_specs=in_specs,
            out_specs=pl.BlockSpec((tile, d), out_index_map),
            scratch_shapes=scratch,
        ),
        # Token tiles are independent -> let v7x megacore split them across TCs.
        compiler_params=pltpu.CompilerParams(
            dimension_semantics=("parallel",)),
    )

    if has_pos:
        out = call(ids, pos, word_embeddings, position_embeddings)
    else:
        out = call(ids, word_embeddings)

    out = out[:n_tok]
    if combine_batch_seqlen_dim:
        return out                       # (batch * seqlen, d)
    return out.reshape(batch, seqlen, d)


class GPT2EmbeddingsPallas:
    """JAX/Pallas equivalent of flash_attn GPT2Embeddings (forward only)."""

    def __init__(self, embed_dim, vocab_size, max_position_embeddings,
                 padding_idx=None, dtype=jnp.float32, key=None):
        if key is None:
            key = jax.random.PRNGKey(0)
        k_w, k_p = jax.random.split(key)
        self.embed_dim = embed_dim
        self.vocab_size = vocab_size
        self.max_position_embeddings = max_position_embeddings

        # nn.Embedding default init: N(0, 1); padding_idx row zeroed.
        w = jax.random.normal(k_w, (vocab_size, embed_dim), dtype=dtype)
        if padding_idx is not None:
            w = w.at[padding_idx].set(0.0)
        self.word_embeddings = w
        self.position_embeddings = (
            jax.random.normal(k_p, (max_position_embeddings, embed_dim), dtype=dtype)
            if max_position_embeddings > 0 else None)

    def __call__(self, input_ids, position_ids=None, combine_batch_seqlen_dim=False):
        return gpt2_embeddings_forward(
            self.word_embeddings, self.position_embeddings, input_ids,
            position_ids=position_ids,
            combine_batch_seqlen_dim=combine_batch_seqlen_dim)


if __name__ == "__main__":
    embed_dim = 128
    vocab_size = 512
    max_position_embeddings = 64
    batch, seqlen = 2, 8

    key = jax.random.PRNGKey(0)
    k_params, k_ids, k_pos = jax.random.split(key, 3)

    module = GPT2EmbeddingsPallas(embed_dim, vocab_size, max_position_embeddings,
                                  padding_idx=0, dtype=jnp.float32, key=k_params)
    input_ids = jax.random.randint(k_ids, (batch, seqlen), 0, vocab_size,
                                   dtype=jnp.int32)

    # 1) Default position_ids (= arange(seqlen)), like the PyTorch module.
    out = jax.block_until_ready(module(input_ids))
    ref = (jnp.take(module.word_embeddings, input_ids, axis=0)
           + jnp.take(module.position_embeddings,
                      jnp.arange(seqlen, dtype=jnp.int32), axis=0)[None, :, :])
    assert out.shape == (batch, seqlen, embed_dim)
    assert out.dtype == jnp.float32
    assert jnp.allclose(out, ref, atol=1e-6, rtol=1e-6)

    # 2) Explicit (arbitrary) position_ids.
    position_ids = jax.random.randint(k_pos, (batch, seqlen), 0,
                                      max_position_embeddings, dtype=jnp.int32)
    out2 = jax.block_until_ready(module(input_ids, position_ids=position_ids))
    ref2 = (jnp.take(module.word_embeddings, input_ids, axis=0)
            + jnp.take(module.position_embeddings, position_ids, axis=0))
    assert jnp.allclose(out2, ref2, atol=1e-6, rtol=1e-6)

    # 3) max_position_embeddings <= 0 path (word embeddings only).
    module_nopos = GPT2EmbeddingsPallas(embed_dim, vocab_size, 0,
                                        padding_idx=0, dtype=jnp.float32,
                                        key=k_params)
    out3 = jax.block_until_ready(module_nopos(input_ids))
    ref3 = jnp.take(module_nopos.word_embeddings, input_ids, axis=0)
    assert jnp.allclose(out3, ref3, atol=1e-6, rtol=1e-6)

    # 4) combine_batch_seqlen_dim=True ('b s d -> (b s) d') flattening.
    out_flat = jax.block_until_ready(module(input_ids, combine_batch_seqlen_dim=True))
    assert out_flat.shape == (batch * seqlen, embed_dim)
    assert jnp.allclose(out_flat, ref.reshape(batch * seqlen, embed_dim), atol=1e-6)

    print("KERNEL_OK")
</pallas_src>

<mosaic_0001>
module attributes {stable_mosaic.version = 11 : i64} {
  func.func @_gpt2_embed_kernel(%arg0: i32, %arg1: memref<16xi32, #tpu.memory_space<smem>>, %arg2: memref<16xi32, #tpu.memory_space<smem>>, %arg3: memref<512x128xf32, #tpu.memory_space<any>>, %arg4: memref<64x128xf32, #tpu.memory_space<any>>, %arg5: memref<16x128xf32, #tpu.memory_space<vmem>>, %arg6: memref<16x128xf32, #tpu.memory_space<vmem>>, %arg7: memref<16x128xf32, #tpu.memory_space<vmem>>, %arg8: memref<2x8x!tpu.dma_semaphore, #tpu.memory_space<semaphore_mem>>) attributes {dimension_semantics = [#tpu.dimension_semantics<parallel>], iteration_bounds = array<i64: 1>, scalar_prefetch = 2 : i64, scratch_operands = 3 : i64, tpu.core_type = #tpu.core_type<tc>, window_params = [{}, {}, {transform_indices = @transform_2, window_bounds = array<i64: 16, 128>}]} {
    %c16_i32 = arith.constant 16 : i32
    %0 = arith.muli %arg0, %c16_i32 : i32
    %c0_i32 = arith.constant 0 : i32
    %1 = arith.addi %0, %c0_i32 : i32
    %2 = arith.index_cast %1 : i32 to index
    %3 = memref.load %arg1[%2] : memref<16xi32, #tpu.memory_space<smem>>
    %c0_i32_0 = arith.constant 0 : i32
    %c0_i32_1 = arith.constant 0 : i32
    %c0_i32_2 = arith.constant 0 : i32
    %4 = tpu.memref_slice %arg3[%3, %c0_i32_2] : memref<512x128xf32, #tpu.memory_space<any>> -> memref<1x128xf32, #tpu.memory_space<any>>
    %c0_i32_3 = arith.constant 0 : i32
    %c0_i32_4 = arith.constant 0 : i32
    %5 = tpu.memref_slice %arg6[%c0_i32_3, %c0_i32_4] : memref<16x128xf32, #tpu.memory_space<vmem>> -> memref<1x128xf32, #tpu.memory_space<vmem>>
    %6 = tpu.memref_slice %arg8[%c0_i32_0, %c0_i32_1] : memref<2x8x!tpu.dma_semaphore, #tpu.memory_space<semaphore_mem>> -> memref<1x1x!tpu.dma_semaphore, #tpu.memory_space<semaphore_mem>>
    %7 = tpu.memref_squeeze %6 : memref<1x1x!tpu.dma_semaphore, #tpu.memory_space<semaphore_mem>> -> memref<!tpu.dma_semaphore, #tpu.memory_space<semaphore_mem>>
    tpu.enqueue_dma source(%4 : memref<1x128xf32, #tpu.memory_space<any>>) target(%5 : memref<1x128xf32, #tpu.memory_space<vmem>>) target_semaphore(%7 : memref<!tpu.dma_semaphore, #tpu.memory_space<semaphore_mem>>)
    %c0_i32_5 = arith.constant 0 : i32
    %8 = arith.addi %0, %c0_i32_5 : i32
    %9 = arith.index_cast %8 : i32 to index
    %10 = memref.load %arg2[%9] : memref<16xi32, #tpu.memory_space<smem>>
    %c1_i32 = arith.constant 1 : i32
    %c0_i32_6 = arith.constant 0 : i32
    %c0_i32_7 = arith.constant 0 : i32
    %11 = tpu.memref_slice %arg4[%10, %c0_i32_7] : memref<64x128xf32, #tpu.memory_space<any>> -> memref<1x128xf32, #tpu.memory_space<any>>
    %c0_i32_8 = arith.constant 0 : i32
    %c0_i32_9 = arith.constant 0 : i32
    %12 = tpu.memref_slice %arg7[%c0_i32_8, %c0_i32_9] : memref<16x128xf32, #tpu.memory_space<vmem>> -> memref<1x128xf32, #tpu.memory_space<vmem>>
    %13 = tpu.memref_slice %arg8[%c1_i32, %c0_i32_6] : memref<2x8x!tpu.dma_semaphore, #tpu.memory_space<semaphore_mem>> -> memref<1x1x!tpu.dma_semaphore, #tpu.memory_space<semaphore_mem>>
    %14 = tpu.memref_squeeze %13 : memref<1x1x!tpu.dma_semaphore, #tpu.memory_space<semaphore_mem>> -> memref<!tpu.dma_semaphore, #tpu.memory_space<semaphore_mem>>
    tpu.enqueue_dma source(%11 : memref<1x128xf32, #tpu.memory_space<any>>) target(%12 : memref<1x128xf32, #tpu.memory_space<vmem>>) target_semaphore(%14 : memref<!tpu.dma_semaphore, #tpu.memory_space<semaphore_mem>>)
    %c1_i32_10 = arith.constant 1 : i32
    %15 = arith.addi %0, %c1_i32_10 : i32
    %16 = arith.index_cast %15 : i32 to index
    %17 = memref.load %arg1[%16] : memref<16xi32, #tpu.memory_space<smem>>
    %c0_i32_11 = arith.constant 0 : i32
    %c1_i32_12 = arith.constant 1 : i32
    %c0_i32_13 = arith.constant 0 : i32
    %18 = tpu.memref_slice %arg3[%17, %c0_i32_13] : memref<512x128xf32, #tpu.memory_space<any>> -> memref<1x128xf32, #tpu.memory_space<any>>
    %c1_i32_14 = arith.constant 1 : i32
    %c0_i32_15 = arith.constant 0 : i32
    %19 = tpu.memref_slice %arg6[%c1_i32_14, %c0_i32_15] : memref<16x128xf32, #tpu.memory_space<vmem>> -> memref<1x128xf32, #tpu.memory_space<vmem>>
    %20 = tpu.memref_slice %arg8[%c0_i32_11, %c1_i32_12] : memref<2x8x!tpu.dma_semaphore, #tpu.memory_space<semaphore_mem>> -> memref<1x1x!tpu.dma_semaphore, #tpu.memory_space<semaphore_mem>>
    %21 = tpu.memref_squeeze %20 : memref<1x1x!tpu.dma_semaphore, #tpu.memory_space<semaphore_mem>> -> memref<!tpu.dma_semaphore, #tpu.memory_space<semaphore_mem>>
    tpu.enqueue_dma source(%18 : memref<1x128xf32, #tpu.memory_space<any>>) target(%19 : memref<1x128xf32, #tpu.memory_space<vmem>>) target_semaphore(%21 : memref<!tpu.dma_semaphore, #tpu.memory_space<semaphore_mem>>)
    %c1_i32_16 = arith.constant 1 : i32
    %22 = arith.addi %0, %c1_i32_16 : i32
    %23 = arith.index_cast %22 : i32 to index
    %24 = memref.load %arg2[%23] : memref<16xi32, #tpu.memory_space<smem>>
    %c1_i32_17 = arith.constant 1 : i32
    %c1_i32_18 = arith.constant 1 : i32
    %c0_i32_19 = arith.constant 0 : i32
    %25 = tpu.memref_slice %arg4[%24, %c0_i32_19] : memref<64x128xf32, #tpu.memory_space<any>> -> memref<1x128xf32, #tpu.memory_space<any>>
    %c1_i32_20 = arith.constant 1 : i32
    %c0_i32_21 = arith.constant 0 : i32
    %26 = tpu.memref_slice %arg7[%c1_i32_20, %c0_i32_21] : memref<16x128xf32, #tpu.memory_space<vmem>> -> memref<1x128xf32, #tpu.memory_space<vmem>>
    %27 = tpu.memref_slice %arg8[%c1_i32_17, %c1_i32_18] : memref<2x8x!tpu.dma_semaphore, #tpu.memory_space<semaphore_mem>> -> memref<1x1x!tpu.dma_semaphore, #tpu.memory_space<semaphore_mem>>
    %28 = tpu.memref_squeeze %27 : memref<1x1x!tpu.dma_semaphore, #tpu.memory_space<semaphore_mem>> -> memref<!tpu.dma_semaphore, #tpu.memory_space<semaphore_mem>>
    tpu.enqueue_dma source(%25 : memref<1x128xf32, #tpu.memory_space<any>>) target(%26 : memref<1x128xf32, #tpu.memory_space<vmem>>) target_semaphore(%28 : memref<!tpu.dma_semaphore, #tpu.memory_space<semaphore_mem>>)
    %c2_i32 = arith.constant 2 : i32
    %29 = arith.addi %0, %c2_i32 : i32
    %30 = arith.index_cast %29 : i32 to index
    %31 = memref.load %arg1[%30] : memref<16xi32, #tpu.memory_space<smem>>
    %c0_i32_22 = arith.constant 0 : i32
    %c2_i32_23 = arith.constant 2 : i32
    %c0_i32_24 = arith.constant 0 : i32
    %32 = tpu.memref_slice %arg3[%31, %c0_i32_24] : memref<512x128xf32, #tpu.memory_space<any>> -> memref<1x128xf32, #tpu.memory_space<any>>
    %c2_i32_25 = arith.constant 2 : i32
    %c0_i32_26 = arith.constant 0 : i32
    %33 = tpu.memref_slice %arg6[%c2_i32_25, %c0_i32_26] : memref<16x128xf32, #tpu.memory_space<vmem>> -> memref<1x128xf32, #tpu.memory_space<vmem>>
    %34 = tpu.memref_slice %arg8[%c0_i32_22, %c2_i32_23] : memref<2x8x!tpu.dma_semaphore, #tpu.memory_space<semaphore_mem>> -> memref<1x1x!tpu.dma_semaphore, #tpu.memory_space<semaphore_mem>>
    %35 = tpu.memref_squeeze %34 : memref<1x1x!tpu.dma_semaphore, #tpu.memory_space<semaphore_mem>> -> memref<!tpu.dma_semaphore, #tpu.memory_space<semaphore_mem>>
    tpu.enqueue_dma source(%32 : memref<1x128xf32, #tpu.memory_space<any>>) target(%33 : memref<1x128xf32, #tpu.memory_space<vmem>>) target_semaphore(%35 : memref<!tpu.dma_semaphore, #tpu.memory_space<semaphore_mem>>)
    %c2_i32_27 = arith.constant 2 : i32
    %36 = arith.addi %0, %c2_i32_27 : i32
    %37 = arith.index_cast %36 : i32 to index
    %38 = memref.load %arg2[%37] : memref<16xi32, #tpu.memory_space<smem>>
    %c1_i32_28 = arith.constant 1 : i32
    %c2_i32_29 = arith.constant 2 : i32
    %c0_i32_30 = arith.constant 0 : i32
    %39 = tpu.memref_slice %arg4[%38, %c0_i32_30] : memref<64x128xf32, #tpu.memory_space<any>> -> memref<1x128xf32, #tpu.memory_space<any>>
    %c2_i32_31 = arith.constant 2 : i32
    %c0_i32_32 = arith.constant 0 : i32
    %40 = tpu.memref_slice %arg7[%c2_i32_31, %c0_i32_32] : memref<16x128xf32, #tpu.memory_space<vmem>> -> memref<1x128xf32, #tpu.memory_space<vmem>>
    %41 = tpu.memref_slice %arg8[%c1_i32_28, %c2_i32_29] : memref<2x8x!tpu.dma_semaphore, #tpu.memory_space<semaphore_mem>> -> memref<1x1x!tpu.dma_semaphore, #tpu.memory_space<semaphore_mem>>
    %42 = tpu.memref_squeeze %41 : memref<1x1x!tpu.dma_semaphore, #tpu.memory_space<semaphore_mem>> -> memref<!tpu.dma_semaphore, #tpu.memory_space<semaphore_mem>>
    tpu.enqueue_dma source(%39 : memref<1x128xf32, #tpu.memory_space<any>>) target(%40 : memref<1x128xf32, #tpu.memory_space<vmem>>) target_semaphore(%42 : memref<!tpu.dma_semaphore, #tpu.memory_space<semaphore_mem>>)
    %c3_i32 = arith.constant 3 : i32
    %43 = arith.addi %0, %c3_i32 : i32
    %44 = arith.index_cast %43 : i32 to index
    %45 = memref.load %arg1[%44] : memref<16xi32, #tpu.memory_space<smem>>
    %c0_i32_33 = arith.constant 0 : i32
    %c3_i32_34 = arith.constant 3 : i32
    %c0_i32_35 = arith.constant 0 : i32
    %46 = tpu.memref_slice %arg3[%45, %c0_i32_35] : memref<512x128xf32, #tpu.memory_space<any>> -> memref<1x128xf32, #tpu.memory_space<any>>
    %c3_i32_36 = arith.constant 3 : i32
    %c0_i32_37 = arith.constant 0 : i32
    %47 = tpu.memref_slice %arg6[%c3_i32_36, %c0_i32_37] : memref<16x128xf32, #tpu.memory_space<vmem>> -> memref<1x128xf32, #tpu.memory_space<vmem>>
    %48 = tpu.memref_slice %arg8[%c0_i32_33, %c3_i32_34] : memref<2x8x!tpu.dma_semaphore, #tpu.memory_space<semaphore_mem>> -> memref<1x1x!tpu.dma_semaphore, #tpu.memory_space<semaphore_mem>>
    %49 = tpu.memref_squeeze %48 : memref<1x1x!tpu.dma_semaphore, #tpu.memory_space<semaphore_mem>> -> memref<!tpu.dma_semaphore, #tpu.memory_space<semaphore_mem>>
    tpu.enqueue_dma source(%46 : memref<1x128xf32, #tpu.memory_space<any>>) target(%47 : memref<1x128xf32, #tpu.memory_space<vmem>>) target_semaphore(%49 : memref<!tpu.dma_semaphore, #tpu.memory_space<semaphore_mem>>)
    %c3_i32_38 = arith.constant 3 : i32
    %50 = arith.addi %0, %c3_i32_38 : i32
    %51 = arith.index_cast %50 : i32 to index
    %52 = memref.load %arg2[%51] : memref<16xi32, #tpu.memory_space<smem>>
    %c1_i32_39 = arith.constant 1 : i32
    %c3_i32_40 = arith.constant 3 : i32
    %c0_i32_41 = arith.constant 0 : i32
    %53 = tpu.memref_slice %arg4[%52, %c0_i32_41] : memref<64x128xf32, #tpu.memory_space<any>> -> memref<1x128xf32, #tpu.memory_space<any>>
    %c3_i32_42 = arith.constant 3 : i32
    %c0_i32_43 = arith.constant 0 : i32
    %54 = tpu.memref_slice %arg7[%c3_i32_42, %c0_i32_43] : memref<16x128xf32, #tpu.memory_space<vmem>> -> memref<1x128xf32, #tpu.memory_space<vmem>>
    %55 = tpu.memref_slice %arg8[%c1_i32_39, %c3_i32_40] : memref<2x8x!tpu.dma_semaphore, #tpu.memory_space<semaphore_mem>> -> memref<1x1x!tpu.dma_semaphore, #tpu.memory_space<semaphore_mem>>
    %56 = tpu.memref_squeeze %55 : memref<1x1x!tpu.dma_semaphore, #tpu.memory_space<semaphore_mem>> -> memref<!tpu.dma_semaphore, #tpu.memory_space<semaphore_mem>>
    tpu.enqueue_dma source(%53 : memref<1x128xf32, #tpu.memory_space<any>>) target(%54 : memref<1x128xf32, #tpu.memory_space<vmem>>) target_semaphore(%56 : memref<!tpu.dma_semaphore, #tpu.memory_space<semaphore_mem>>)
    %c4_i32 = arith.constant 4 : i32
    %57 = arith.addi %0, %c4_i32 : i32
    %58 = arith.index_cast %57 : i32 to index
    %59 = memref.load %arg1[%58] : memref<16xi32, #tpu.memory_space<smem>>
    %c0_i32_44 = arith.constant 0 : i32
    %c4_i32_45 = arith.constant 4 : i32
    %c0_i32_46 = arith.constant 0 : i32
    %60 = tpu.memref_slice %arg3[%59, %c0_i32_46] : memref<512x128xf32, #tpu.memory_space<any>> -> memref<1x128xf32, #tpu.memory_space<any>>
    %c4_i32_47 = arith.constant 4 : i32
    %c0_i32_48 = arith.constant 0 : i32
    %61 = tpu.memref_slice %arg6[%c4_i32_47, %c0_i32_48] : memref<16x128xf32, #tpu.memory_space<vmem>> -> memref<1x128xf32, #tpu.memory_space<vmem>>
    %62 = tpu.memref_slice %arg8[%c0_i32_44, %c4_i32_45] : memref<2x8x!tpu.dma_semaphore, #tpu.memory_space<semaphore_mem>> -> memref<1x1x!tpu.dma_semaphore, #tpu.memory_space<semaphore_mem>>
    %63 = tpu.memref_squeeze %62 : memref<1x1x!tpu.dma_semaphore, #tpu.memory_space<semaphore_mem>> -> memref<!tpu.dma_semaphore, #tpu.memory_space<semaphore_mem>>
    tpu.enqueue_dma source(%60 : memref<1x128xf32, #tpu.memory_space<any>>) target(%61 : memref<1x128xf32, #tpu.memory_space<vmem>>) target_semaphore(%63 : memref<!tpu.dma_semaphore, #tpu.memory_space<semaphore_mem>>)
    %c4_i32_49 = arith.constant 4 : i32
    %64 = arith.addi %0, %c4_i32_49 : i32
    %65 = arith.index_cast %64 : i32 to index
    %66 = memref.load %arg2[%65] : memref<16xi32, #tpu.memory_space<smem>>
    %c1_i32_50 = arith.constant 1 : i32
    %c4_i32_51 = arith.constant 4 : i32
    %c0_i32_52 = arith.constant 0 : i32
    %67 = tpu.memref_slice %arg4[%66, %c0_i32_52] : memref<64x128xf32, #tpu.memory_space<any>> -> memref<1x128xf32, #tpu.memory_space<any>>
    %c4_i32_53 = arith.constant 4 : i32
    %c0_i32_54 = arith.constant 0 : i32
    %68 = tpu.memref_slice %arg7[%c4_i32_53, %c0_i32_54] : memref<16x128xf32, #tpu.memory_space<vmem>> -> memref<1x128xf32, #tpu.memory_space<vmem>>
    %69 = tpu.memref_slice %arg8[%c1_i32_50, %c4_i32_51] : memref<2x8x!tpu.dma_semaphore, #tpu.memory_space<semaphore_mem>> -> memref<1x1x!tpu.dma_semaphore, #tpu.memory_space<semaphore_mem>>
    %70 = tpu.memref_squeeze %69 : memref<1x1x!tpu.dma_semaphore, #tpu.memory_space<semaphore_mem>> -> memref<!tpu.dma_semaphore, #tpu.memory_space<semaphore_mem>>
    tpu.enqueue_dma source(%67 : memref<1x128xf32, #tpu.memory_space<any>>) target(%68 : memref<1x128xf32, #tpu.memory_space<vmem>>) target_semaphore(%70 : memref<!tpu.dma_semaphore, #tpu.memory_space<semaphore_mem>>)
    %c5_i32 = arith.constant 5 : i32
    %71 = arith.addi %0, %c5_i32 : i32
    %72 = arith.index_cast %71 : i32 to index
    %73 = memref.load %arg1[%72] : memref<16xi32, #tpu.memory_space<smem>>
    %c0_i32_55 = arith.constant 0 : i32
    %c5_i32_56 = arith.constant 5 : i32
    %c0_i32_57 = arith.constant 0 : i32
    %74 = tpu.memref_slice %arg3[%73, %c0_i32_57] : memref<512x128xf32, #tpu.memory_space<any>> -> memref<1x128xf32, #tpu.memory_space<any>>
    %c5_i32_58 = arith.constant 5 : i32
    %c0_i32_59 = arith.constant 0 : i32
    %75 = tpu.memref_slice %arg6[%c5_i32_58, %c0_i32_59] : memref<16x128xf32, #tpu.memory_space<vmem>> -> memref<1x128xf32, #tpu.memory_space<vmem>>
    %76 = tpu.memref_slice %arg8[%c0_i32_55, %c5_i32_56] : memref<2x8x!tpu.dma_semaphore, #tpu.memory_space<semaphore_mem>> -> memref<1x1x!tpu.dma_semaphore, #tpu.memory_space<semaphore_mem>>
    %77 = tpu.memref_squeeze %76 : memref<1x1x!tpu.dma_semaphore, #tpu.memory_space<semaphore_mem>> -> memref<!tpu.dma_semaphore, #tpu.memory_space<semaphore_mem>>
    tpu.enqueue_dma source(%74 : memref<1x128xf32, #tpu.memory_space<any>>) target(%75 : memref<1x128xf32, #tpu.memory_space<vmem>>) target_semaphore(%77 : memref<!tpu.dma_semaphore, #tpu.memory_space<semaphore_mem>>)
    %c5_i32_60 = arith.constant 5 : i32
    %78 = arith.addi %0, %c5_i32_60 : i32
    %79 = arith.index_cast %78 : i32 to index
    %80 = memref.load %arg2[%79] : memref<16xi32, #tpu.memory_space<smem>>
    %c1_i32_61 = arith.constant 1 : i32
    %c5_i32_62 = arith.constant 5 : i32
    %c0_i32_63 = arith.constant 0 : i32
    %81 = tpu.memref_slice %arg4[%80, %c0_i32_63] : memref<64x128xf32, #tpu.memory_space<any>> -> memref<1x128xf32, #tpu.memory_space<any>>
    %c5_i32_64 = arith.constant 5 : i32
    %c0_i32_65 = arith.constant 0 : i32
    %82 = tpu.memref_slice %arg7[%c5_i32_64, %c0_i32_65] : memref<16x128xf32, #tpu.memory_space<vmem>> -> memref<1x128xf32, #tpu.memory_space<vmem>>
    %83 = tpu.memref_slice %arg8[%c1_i32_61, %c5_i32_62] : memref<2x8x!tpu.dma_semaphore, #tpu.memory_space<semaphore_mem>> -> memref<1x1x!tpu.dma_semaphore, #tpu.memory_space<semaphore_mem>>
    %84 = tpu.memref_squeeze %83 : memref<1x1x!tpu.dma_semaphore, #tpu.memory_space<semaphore_mem>> -> memref<!tpu.dma_semaphore, #tpu.memory_space<semaphore_mem>>
    tpu.enqueue_dma source(%81 : memref<1x128xf32, #tpu.memory_space<any>>) target(%82 : memref<1x128xf32, #tpu.memory_space<vmem>>) target_semaphore(%84 : memref<!tpu.dma_semaphore, #tpu.memory_space<semaphore_mem>>)
    %c6_i32 = arith.constant 6 : i32
    %85 = arith.addi %0, %c6_i32 : i32
    %86 = arith.index_cast %85 : i32 to index
    %87 = memref.load %arg1[%86] : memref<16xi32, #tpu.memory_space<smem>>
    %c0_i32_66 = arith.constant 0 : i32
    %c6_i32_67 = arith.constant 6 : i32
    %c0_i32_68 = arith.constant 0 : i32
    %88 = tpu.memref_slice %arg3[%87, %c0_i32_68] : memref<512x128xf32, #tpu.memory_space<any>> -> memref<1x128xf32, #tpu.memory_space<any>>
    %c6_i32_69 = arith.constant 6 : i32
    %c0_i32_70 = arith.constant 0 : i32
    %89 = tpu.memref_slice %arg6[%c6_i32_69, %c0_i32_70] : memref<16x128xf32, #tpu.memory_space<vmem>> -> memref<1x128xf32, #tpu.memory_space<vmem>>
    %90 = tpu.memref_slice %arg8[%c0_i32_66, %c6_i32_67] : memref<2x8x!tpu.dma_semaphore, #tpu.memory_space<semaphore_mem>> -> memref<1x1x!tpu.dma_semaphore, #tpu.memory_space<semaphore_mem>>
    %91 = tpu.memref_squeeze %90 : memref<1x1x!tpu.dma_semaphore, #tpu.memory_space<semaphore_mem>> -> memref<!tpu.dma_semaphore, #tpu.memory_space<semaphore_mem>>
    tpu.enqueue_dma source(%88 : memref<1x128xf32, #tpu.memory_space<any>>) target(%89 : memref<1x128xf32, #tpu.memory_space<vmem>>) target_semaphore(%91 : memref<!tpu.dma_semaphore, #tpu.memory_space<semaphore_mem>>)
    %c6_i32_71 = arith.constant 6 : i32
    %92 = arith.addi %0, %c6_i32_71 : i32
    %93 = arith.index_cast %92 : i32 to index
    %94 = memref.load %arg2[%93] : memref<16xi32, #tpu.memory_space<smem>>
    %c1_i32_72 = arith.constant 1 : i32
    %c6_i32_73 = arith.constant 6 : i32
    %c0_i32_74 = arith.constant 0 : i32
    %95 = tpu.memref_slice %arg4[%94, %c0_i32_74] : memref<64x128xf32, #tpu.memory_space<any>> -> memref<1x128xf32, #tpu.memory_space<any>>
    %c6_i32_75 = arith.constant 6 : i32
    %c0_i32_76 = arith.constant 0 : i32
    %96 = tpu.memref_slice %arg7[%c6_i32_75, %c0_i32_76] : memref<16x128xf32, #tpu.memory_space<vmem>> -> memref<1x128xf32, #tpu.memory_space<vmem>>
    %97 = tpu.memref_slice %arg8[%c1_i32_72, %c6_i32_73] : memref<2x8x!tpu.dma_semaphore, #tpu.memory_space<semaphore_mem>> -> memref<1x1x!tpu.dma_semaphore, #tpu.memory_space<semaphore_mem>>
    %98 = tpu.memref_squeeze %97 : memref<1x1x!tpu.dma_semaphore, #tpu.memory_space<semaphore_mem>> -> memref<!tpu.dma_semaphore, #tpu.memory_space<semaphore_mem>>
    tpu.enqueue_dma source(%95 : memref<1x128xf32, #tpu.memory_space<any>>) target(%96 : memref<1x128xf32, #tpu.memory_space<vmem>>) target_semaphore(%98 : memref<!tpu.dma_semaphore, #tpu.memory_space<semaphore_mem>>)
    %c7_i32 = arith.constant 7 : i32
    %99 = arith.addi %0, %c7_i32 : i32
    %100 = arith.index_cast %99 : i32 to index
    %101 = memref.load %arg1[%100] : memref<16xi32, #tpu.memory_space<smem>>
    %c0_i32_77 = arith.constant 0 : i32
    %c7_i32_78 = arith.constant 7 : i32
    %c0_i32_79 = arith.constant 0 : i32
    %102 = tpu.memref_slice %arg3[%101, %c0_i32_79] : memref<512x128xf32, #tpu.memory_space<any>> -> memref<1x128xf32, #tpu.memory_space<any>>
    %c7_i32_80 = arith.constant 7 : i32
    %c0_i32_81 = arith.constant 0 : i32
    %103 = tpu.memref_slice %arg6[%c7_i32_80, %c0_i32_81] : memref<16x128xf32, #tpu.memory_space<vmem>> -> memref<1x128xf32, #tpu.memory_space<vmem>>
    %104 = tpu.memref_slice %arg8[%c0_i32_77, %c7_i32_78] : memref<2x8x!tpu.dma_semaphore, #tpu.memory_space<semaphore_mem>> -> memref<1x1x!tpu.dma_semaphore, #tpu.memory_space<semaphore_mem>>
    %105 = tpu.memref_squeeze %104 : memref<1x1x!tpu.dma_semaphore, #tpu.memory_space<semaphore_mem>> -> memref<!tpu.dma_semaphore, #tpu.memory_space<semaphore_mem>>
    tpu.enqueue_dma source(%102 : memref<1x128xf32, #tpu.memory_space<any>>) target(%103 : memref<1x128xf32, #tpu.memory_space<vmem>>) target_semaphore(%105 : memref<!tpu.dma_semaphore, #tpu.memory_space<semaphore_mem>>)
    %c7_i32_82 = arith.constant 7 : i32
    %106 = arith.addi %0, %c7_i32_82 : i32
    %107 = arith.index_cast %106 : i32 to index
    %108 = memref.load %arg2[%107] : memref<16xi32, #tpu.memory_space<smem>>
    %c1_i32_83 = arith.constant 1 : i32
    %c7_i32_84 = arith.constant 7 : i32
    %c0_i32_85 = arith.constant 0 : i32
    %109 = tpu.memref_slice %arg4[%108, %c0_i32_85] : memref<64x128xf32, #tpu.memory_space<any>> -> memref<1x128xf32, #tpu.memory_space<any>>
    %c7_i32_86 = arith.constant 7 : i32
    %c0_i32_87 = arith.constant 0 : i32
    %110 = tpu.memref_slice %arg7[%c7_i32_86, %c0_i32_87] : memref<16x128xf32, #tpu.memory_space<vmem>> -> memref<1x128xf32, #tpu.memory_space<vmem>>
    %111 = tpu.memref_slice %arg8[%c1_i32_83, %c7_i32_84] : memref<2x8x!tpu.dma_semaphore, #tpu.memory_space<semaphore_mem>> -> memref<1x1x!tpu.dma_semaphore, #tpu.memory_space<semaphore_mem>>
    %112 = tpu.memref_squeeze %111 : memref<1x1x!tpu.dma_semaphore, #tpu.memory_space<semaphore_mem>> -> memref<!tpu.dma_semaphore, #tpu.memory_space<semaphore_mem>>
    tpu.enqueue_dma source(%109 : memref<1x128xf32, #tpu.memory_space<any>>) target(%110 : memref<1x128xf32, #tpu.memory_space<vmem>>) target_semaphore(%112 : memref<!tpu.dma_semaphore, #tpu.memory_space<semaphore_mem>>)
    %c0_i32_88 = arith.constant 0 : i32
    %c8_i32 = arith.constant 8 : i32
    %113 = arith.addi %c0_i32_88, %c8_i32 : i32
    %c1_i32_89 = arith.constant 1 : i32
    scf.for %arg9 = %c0_i32_88 to %113 step %c1_i32_89  : i32 {
      %c1_i32_100 = arith.constant 1 : i32
      %119 = arith.muli %arg9, %c1_i32_100 : i32
      %c0_i32_101 = arith.constant 0 : i32
      %120 = arith.addi %c0_i32_101, %119 : i32
      %c8_i32_102 = arith.constant 8 : i32
      %c0_i32_103 = arith.constant 0 : i32
      %121 = arith.cmpi eq, %c8_i32_102, %c0_i32_103 : i32
      %c1_i32_104 = arith.constant 1 : i32
      %122 = arith.select %121, %c1_i32_104, %c8_i32_102 : i32
      %123 = arith.remsi %120, %122 : i32
      %c0_i32_105 = arith.constant 0 : i32
      %124 = arith.cmpi ne, %123, %c0_i32_105 : i32
      %c0_i32_106 = arith.constant 0 : i32
      %125 = arith.cmpi slt, %123, %c0_i32_106 : i32
      %c0_i32_107 = arith.constant 0 : i32
      %126 = arith.cmpi slt, %122, %c0_i32_107 : i32
      %127 = arith.xori %125, %126 : i1
      %128 = arith.andi %127, %124 : i1
      %129 = arith.addi %123, %122 : i32
      %130 = arith.select %128, %129, %123 : i32
      %c0_i32_108 = arith.constant 0 : i32
      %c0_i32_109 = arith.constant 0 : i32
      %c0_i32_110 = arith.constant 0 : i32
      %131 = tpu.memref_slice %arg3[%c0_i32_109, %c0_i32_110] : memref<512x128xf32, #tpu.memory_space<any>> -> memref<1x128xf32, #tpu.memory_space<any>>
      %c0_i32_111 = arith.constant 0 : i32
      %132 = tpu.memref_slice %arg6[%120, %c0_i32_111] : memref<16x128xf32, #tpu.memory_space<vmem>> -> memref<1x128xf32, #tpu.memory_space<vmem>>
      %133 = tpu.memref_slice %arg8[%c0_i32_108, %130] : memref<2x8x!tpu.dma_semaphore, #tpu.memory_space<semaphore_mem>> -> memref<1x1x!tpu.dma_semaphore, #tpu.memory_space<semaphore_mem>>
      %134 = tpu.memref_squeeze %133 : memref<1x1x!tpu.dma_semaphore, #tpu.memory_space<semaphore_mem>> -> memref<!tpu.dma_semaphore, #tpu.memory_space<semaphore_mem>>
      tpu.wait_dma2 semaphore(%134 : memref<!tpu.dma_semaphore, #tpu.memory_space<semaphore_mem>>) src(%131 : memref<1x128xf32, #tpu.memory_space<any>>) dst(%132 : memref<1x128xf32, #tpu.memory_space<vmem>>)
      %c1_i32_112 = arith.constant 1 : i32
      %c0_i32_113 = arith.constant 0 : i32
      %c0_i32_114 = arith.constant 0 : i32
      %135 = tpu.memref_slice %arg4[%c0_i32_113, %c0_i32_114] : memref<64x128xf32, #tpu.memory_space<any>> -> memref<1x128xf32, #tpu.memory_space<any>>
      %c0_i32_115 = arith.constant 0 : i32
      %136 = tpu.memref_slice %arg7[%120, %c0_i32_115] : memref<16x128xf32, #tpu.memory_space<vmem>> -> memref<1x128xf32, #tpu.memory_space<vmem>>
      %137 = tpu.memref_slice %arg8[%c1_i32_112, %130] : memref<2x8x!tpu.dma_semaphore, #tpu.memory_space<semaphore_mem>> -> memref<1x1x!tpu.dma_semaphore, #tpu.memory_space<semaphore_mem>>
      %138 = tpu.memref_squeeze %137 : memref<1x1x!tpu.dma_semaphore, #tpu.memory_space<semaphore_mem>> -> memref<!tpu.dma_semaphore, #tpu.memory_space<semaphore_mem>>
      tpu.wait_dma2 semaphore(%138 : memref<!tpu.dma_semaphore, #tpu.memory_space<semaphore_mem>>) src(%135 : memref<1x128xf32, #tpu.memory_space<any>>) dst(%136 : memref<1x128xf32, #tpu.memory_space<vmem>>)
      %c8_i32_116 = arith.constant 8 : i32
      %139 = arith.addi %120, %c8_i32_116 : i32
      %c8_i32_117 = arith.constant 8 : i32
      %c0_i32_118 = arith.constant 0 : i32
      %140 = arith.cmpi eq, %c8_i32_117, %c0_i32_118 : i32
      %c1_i32_119 = arith.constant 1 : i32
      %141 = arith.select %140, %c1_i32_119, %c8_i32_117 : i32
      %142 = arith.remsi %139, %141 : i32
      %c0_i32_120 = arith.constant 0 : i32
      %143 = arith.cmpi ne, %142, %c0_i32_120 : i32
      %c0_i32_121 = arith.constant 0 : i32
      %144 = arith.cmpi slt, %142, %c0_i32_121 : i32
      %c0_i32_122 = arith.constant 0 : i32
      %145 = arith.cmpi slt, %141, %c0_i32_122 : i32
      %146 = arith.xori %144, %145 : i1
      %147 = arith.andi %146, %143 : i1
      %148 = arith.addi %142, %141 : i32
      %149 = arith.select %147, %148, %142 : i32
      %150 = arith.addi %0, %139 : i32
      %151 = arith.index_cast %150 : i32 to index
      %152 = memref.load %arg1[%151] : memref<16xi32, #tpu.memory_space<smem>>
      %c0_i32_123 = arith.constant 0 : i32
      %c0_i32_124 = arith.constant 0 : i32
      %153 = tpu.memref_slice %arg3[%152, %c0_i32_124] : memref<512x128xf32, #tpu.memory_space<any>> -> memref<1x128xf32, #tpu.memory_space<any>>
      %c0_i32_125 = arith.constant 0 : i32
      %154 = tpu.memref_slice %arg6[%139, %c0_i32_125] : memref<16x128xf32, #tpu.memory_space<vmem>> -> memref<1x128xf32, #tpu.memory_space<vmem>>
      %155 = tpu.memref_slice %arg8[%c0_i32_123, %149] : memref<2x8x!tpu.dma_semaphore, #tpu.memory_space<semaphore_mem>> -> memref<1x1x!tpu.dma_semaphore, #tpu.memory_space<semaphore_mem>>
      %156 = tpu.memref_squeeze %155 : memref<1x1x!tpu.dma_semaphore, #tpu.memory_space<semaphore_mem>> -> memref<!tpu.dma_semaphore, #tpu.memory_space<semaphore_mem>>
      tpu.enqueue_dma source(%153 : memref<1x128xf32, #tpu.memory_space<any>>) target(%154 : memref<1x128xf32, #tpu.memory_space<vmem>>) target_semaphore(%156 : memref<!tpu.dma_semaphore, #tpu.memory_space<semaphore_mem>>)
      %157 = arith.addi %0, %139 : i32
      %158 = arith.index_cast %157 : i32 to index
      %159 = memref.load %arg2[%158] : memref<16xi32, #tpu.memory_space<smem>>
      %c1_i32_126 = arith.constant 1 : i32
      %c0_i32_127 = arith.constant 0 : i32
      %160 = tpu.memref_slice %arg4[%159, %c0_i32_127] : memref<64x128xf32, #tpu.memory_space<any>> -> memref<1x128xf32, #tpu.memory_space<any>>
      %c0_i32_128 = arith.constant 0 : i32
      %161 = tpu.memref_slice %arg7[%139, %c0_i32_128] : memref<16x128xf32, #tpu.memory_space<vmem>> -> memref<1x128xf32, #tpu.memory_space<vmem>>
      %162 = tpu.memref_slice %arg8[%c1_i32_126, %149] : memref<2x8x!tpu.dma_semaphore, #tpu.memory_space<semaphore_mem>> -> memref<1x1x!tpu.dma_semaphore, #tpu.memory_space<semaphore_mem>>
      %163 = tpu.memref_squeeze %162 : memref<1x1x!tpu.dma_semaphore, #tpu.memory_space<semaphore_mem>> -> memref<!tpu.dma_semaphore, #tpu.memory_space<semaphore_mem>>
      tpu.enqueue_dma source(%160 : memref<1x128xf32, #tpu.memory_space<any>>) target(%161 : memref<1x128xf32, #tpu.memory_space<vmem>>) target_semaphore(%163 : memref<!tpu.dma_semaphore, #tpu.memory_space<semaphore_mem>>)
    }
    %c8_i32_90 = arith.constant 8 : i32
    %c0_i32_91 = arith.constant 0 : i32
    %c8_i32_92 = arith.constant 8 : i32
    %114 = arith.addi %c0_i32_91, %c8_i32_92 : i32
    %c1_i32_93 = arith.constant 1 : i32
    scf.for %arg9 = %c0_i32_91 to %114 step %c1_i32_93  : i32 {
      %c1_i32_100 = arith.constant 1 : i32
      %119 = arith.muli %arg9, %c1_i32_100 : i32
      %c8_i32_101 = arith.constant 8 : i32
      %120 = arith.addi %c8_i32_101, %119 : i32
      %c8_i32_102 = arith.constant 8 : i32
      %c0_i32_103 = arith.constant 0 : i32
      %121 = arith.cmpi eq, %c8_i32_102, %c0_i32_103 : i32
      %c1_i32_104 = arith.constant 1 : i32
      %122 = arith.select %121, %c1_i32_104, %c8_i32_102 : i32
      %123 = arith.remsi %120, %122 : i32
      %c0_i32_105 = arith.constant 0 : i32
      %124 = arith.cmpi ne, %123, %c0_i32_105 : i32
      %c0_i32_106 = arith.constant 0 : i32
      %125 = arith.cmpi slt, %123, %c0_i32_106 : i32
      %c0_i32_107 = arith.constant 0 : i32
      %126 = arith.cmpi slt, %122, %c0_i32_107 : i32
      %127 = arith.xori %125, %126 : i1
      %128 = arith.andi %127, %124 : i1
      %129 = arith.addi %123, %122 : i32
      %130 = arith.select %128, %129, %123 : i32
      %c0_i32_108 = arith.constant 0 : i32
      %c0_i32_109 = arith.constant 0 : i32
      %c0_i32_110 = arith.constant 0 : i32
      %131 = tpu.memref_slice %arg3[%c0_i32_109, %c0_i32_110] : memref<512x128xf32, #tpu.memory_space<any>> -> memref<1x128xf32, #tpu.memory_space<any>>
      %c0_i32_111 = arith.constant 0 : i32
      %132 = tpu.memref_slice %arg6[%120, %c0_i32_111] : memref<16x128xf32, #tpu.memory_space<vmem>> -> memref<1x128xf32, #tpu.memory_space<vmem>>
      %133 = tpu.memref_slice %arg8[%c0_i32_108, %130] : memref<2x8x!tpu.dma_semaphore, #tpu.memory_space<semaphore_mem>> -> memref<1x1x!tpu.dma_semaphore, #tpu.memory_space<semaphore_mem>>
      %134 = tpu.memref_squeeze %133 : memref<1x1x!tpu.dma_semaphore, #tpu.memory_space<semaphore_mem>> -> memref<!tpu.dma_semaphore, #tpu.memory_space<semaphore_mem>>
      tpu.wait_dma2 semaphore(%134 : memref<!tpu.dma_semaphore, #tpu.memory_space<semaphore_mem>>) src(%131 : memref<1x128xf32, #tpu.memory_space<any>>) dst(%132 : memref<1x128xf32, #tpu.memory_space<vmem>>)
      %c1_i32_112 = arith.constant 1 : i32
      %c0_i32_113 = arith.constant 0 : i32
      %c0_i32_114 = arith.constant 0 : i32
      %135 = tpu.memref_slice %arg4[%c0_i32_113, %c0_i32_114] : memref<64x128xf32, #tpu.memory_space<any>> -> memref<1x128xf32, #tpu.memory_space<any>>
      %c0_i32_115 = arith.constant 0 : i32
      %136 = tpu.memref_slice %arg7[%120, %c0_i32_115] : memref<16x128xf32, #tpu.memory_space<vmem>> -> memref<1x128xf32, #tpu.memory_space<vmem>>
      %137 = tpu.memref_slice %arg8[%c1_i32_112, %130] : memref<2x8x!tpu.dma_semaphore, #tpu.memory_space<semaphore_mem>> -> memref<1x1x!tpu.dma_semaphore, #tpu.memory_space<semaphore_mem>>
      %138 = tpu.memref_squeeze %137 : memref<1x1x!tpu.dma_semaphore, #tpu.memory_space<semaphore_mem>> -> memref<!tpu.dma_semaphore, #tpu.memory_space<semaphore_mem>>
      tpu.wait_dma2 semaphore(%138 : memref<!tpu.dma_semaphore, #tpu.memory_space<semaphore_mem>>) src(%135 : memref<1x128xf32, #tpu.memory_space<any>>) dst(%136 : memref<1x128xf32, #tpu.memory_space<vmem>>)
    }
    %c8_i32_94 = arith.constant 8 : i32
    %c0 = arith.constant 0 : index
    %c0_95 = arith.constant 0 : index
    %115 = vector.load %arg6[%c0, %c0_95] : memref<16x128xf32, #tpu.memory_space<vmem>>, vector<16x128xf32>
    %c0_96 = arith.constant 0 : index
    %c0_97 = arith.constant 0 : index
    %116 = vector.load %arg7[%c0_96, %c0_97] : memref<16x128xf32, #tpu.memory_space<vmem>>, vector<16x128xf32>
    %117 = arith.addf %115, %116 : vector<16x128xf32>
    %c0_98 = arith.constant 0 : index
    %c0_99 = arith.constant 0 : index
    %118 = vector.load %arg5[%c0_98, %c0_99] : memref<16x128xf32, #tpu.memory_space<vmem>>, vector<16x128xf32>
    tpu.vector_store %arg5[%c0_98, %c0_99], %117 {strides = array<i32>} : memref<16x128xf32, #tpu.memory_space<vmem>>, vector<16x128xf32>,
    return
  }
  func.func @transform_2(%arg0: i32, %arg1: memref<16xi32, #tpu.memory_space<smem>>, %arg2: memref<16xi32, #tpu.memory_space<smem>>) -> (i32, i32) {
    %c0_i32 = arith.constant 0 : i32
    %c0_i32_0 = arith.constant 0 : i32
    return %arg0, %c0_i32 : i32, i32
  }
}

</mosaic_0001>

<bundles_post_ra>
// kernel: tpu_custom_call.1
= control target key start
LH: loop header
LB: loop body
LE: loop exit
PB: predicated region body
PF: predicated region fallthrough
CT: control target
= control target key end

     0   :  { %s1554_s0 = inlined_call_operand.hbm [shape: s32[16], index: 0, kind: input, shape index: {}]   ;;  %s1555_s2 = inlined_call_operand.hbm [shape: f32[512,128], index: 2, kind: input, shape index: {}]   ;;  %s1556_s3 = inlined_call_operand.hbm [shape: f32[64,128], index: 3, kind: input, shape index: {}]   ;;  %s1557_s4 = inlined_call_operand.hbm [shape: f32[16,128], index: 4, kind: output, shape index: {}]   ;;  %s1558_s1 = inlined_call_operand.vmem [shape: s32[16], index: 1, kind: input, shape index: {}]  }
   0x1   :  { %s667_s17 = scalar_lea.hbm %s1554_s0, 16 }
   0x2   :  { %p668_p0 = scmp.ne.s32.totalorder %s1554_s0, %s667_s17  ;;  %p671_p1 = scmp.lt.u32.totalorder %s667_s17, %s1554_s0 }
   0x4   :  { %p673_p2 = pnand %p671_p1, %p668_p0 }
   0x6   :  { %676 = shalt.err (!%p673_p2)  }
   0x7   :  { %s1171_s22 = smov [#allocation6]   ;;  %s11_s27 = sshll.u32 %s1558_s1, 4  ;;  %s12_s27 = int_to_ptr.vmem [resolvable:$true] %s11_s27 }
   0x8   :  { %10 = dma.hbm_to_smem %s1554_s0, 16, %s1171_s22, [#allocation5] }
   0x9   :  { %s677_s28 = scalar_lea.vmem %s12_s27, 16  ;;  %p682_p4 = scmp.lt.s32.totalorder %s12_s27, %s12_s27 }
   0xa   :  { %p678_p3 = scmp.ne.s32.totalorder %s12_s27, %s677_s28  ;;  %p683_p5 = scmp.lt.s32.totalorder %s677_s28, %s677_s28 }
   0xc   :  { %p684_p6 = por %p683_p5, %p682_p4 }
   0xe   :  { %p685_p7 = pnand %p684_p6, %p678_p3 }
  0x10   :  { %688 = shalt.err (!%p685_p7)  }
  0x11   :  { %s1172_s29 = smov [#allocation7]  }
  0x12   :  { %14 = dma.vmem_to_smem %s12_s27, 16, %s1172_s29, [#allocation5] }
  0x13   :  { %1151 = dma.done.wait [#allocation5], 32 }
  0x14   :  { %1152 = vsyncadd [#allocation5], 4294967264 }
  0x15   :  { %16 = sfence }
  0x16   :  { %17 = vsyncpa [#allocation9], 0  ;;  %s19_s30 = sld [smem:[#allocation6]]  ;;  %s1173_s0 = smov [#allocation2]  }
  0x17   :  { %s29_s5 = sshll.u32 %s1173_s0, 4  ;;  %s1232_s6 = sld [smem:[#allocation7]]  ;;  %s1234_s5 = int_to_ptr.vmem [resolvable:$true] %s29_s5 }
  0x18   :  { %s1174_s1 = smov [#allocation3]   ;;  %s1236_s8 = sld [smem:[#allocation6 + $0x1]] }
  0x19   :  { %s44_s7 = sshll.u32 %s1174_s1, 4  ;;  %s1175_s9 = smov [#allocation2 + $0x1]   ;;  %s1238_s7 = int_to_ptr.vmem [resolvable:$true] %s44_s7 }
  0x1a   :  { %s61_s10 = sshll.u32 %s1175_s9, 4  ;;  %s1240_s11 = sld [smem:[#allocation7 + $0x1]]  ;;  %s1242_s10 = int_to_ptr.vmem [resolvable:$true] %s61_s10 }
  0x1b   :  { %s1251_s20 = scalar_lea.hbm %s1555_s2, 8192 }
  0x1c   :  { %s573_s12 = sshll.u32 %s19_s30, 4 }
  0x1d   :  { %s21_s15 = scalar_lea.hbm %s1555_s2, %s573_s12  ;;  %s574_s16 = sshll.u32 %s1232_s6, 4 }
  0x1e   :  { %s689_s17 = scalar_lea.hbm %s21_s15, 16  ;;  %p692_p9 = scmp.lt.u32.totalorder %s21_s15, %s1555_s2 }
  0x1f   :  { %p690_p8 = scmp.ne.s32.totalorder %s21_s15, %s689_s17  ;;  %p693_p10 = scmp.lt.u32.totalorder %s1251_s20, %s689_s17 }
  0x20   :  { %p695_p12 = scmp.lt.u32.totalorder %s689_s17, %s21_s15 }
  0x21   :  { %p694_p11 = por %p693_p10, %p692_p9 }
  0x23   :  { %p696_p13 = por %p695_p12, %p694_p11 }
  0x25   :  { %p697_p0 = pnand %p696_p13, %p690_p8 }
  0x27   :  { %700 = shalt.err (!%p697_p0)  }
  0x28   :  { %s701_s23 = scalar_lea.vmem %s1234_s5, 16  ;;  %s1260_s24 = scalar_lea.vmem %s1234_s5, 256 }
  0x29   :  { %p702_p1 = scmp.ne.s32.totalorder %s1234_s5, %s701_s23  ;;  %p706_p2 = scmp.lt.s32.totalorder %s1234_s5, %s1234_s5 }
  0x2a   :  { %p707_p3 = scmp.lt.s32.totalorder %s1260_s24, %s701_s23 }
  0x2c   :  { %p708_p4 = por %p707_p3, %p706_p2 }
  0x2e   :  { %p709_p5 = pnand %p708_p4, %p702_p1 }
  0x30   :  { %712 = shalt.err (!%p709_p5)  }
  0x31   :  { %32 = dma.hbm_to_vmem [thread:$0]  %s21_s15, 16, %s1234_s5, [#allocation4] }
  0x32   :  { %s35_s27 = scalar_lea.hbm %s1556_s3, %s574_s16  ;;  %s576_s28 = sshll.u32 %s1236_s8, 4 }
  0x33   :  { %s713_s29 = scalar_lea.hbm %s35_s27, 16  ;;  %s1273_s6 = scalar_lea.hbm %s1556_s3, 1024 }
  0x34   :  { %p714_p6 = scmp.ne.s32.totalorder %s35_s27, %s713_s29  ;;  %p716_p7 = scmp.lt.u32.totalorder %s35_s27, %s1556_s3 }
  0x35   :  { %p717_p8 = scmp.lt.u32.totalorder %s1273_s6, %s713_s29  ;;  %p719_p10 = scmp.lt.u32.totalorder %s713_s29, %s35_s27 }
  0x37   :  { %p718_p9 = por %p717_p8, %p716_p7 }
  0x39   :  { %p720_p11 = por %p719_p10, %p718_p9 }
  0x3b   :  { %p721_p12 = pnand %p720_p11, %p714_p6 }
  0x3d   :  { %724 = shalt.err (!%p721_p12)  }
  0x3e   :  { %s725_s8 = scalar_lea.vmem %s1238_s7, 16  ;;  %s1282_s12 = scalar_lea.vmem %s1238_s7, 256 }
  0x3f   :  { %p726_p13 = scmp.ne.s32.totalorder %s1238_s7, %s725_s8  ;;  %p730_p0 = scmp.lt.s32.totalorder %s1238_s7, %s1238_s7 }
  0x40   :  { %p731_p1 = scmp.lt.s32.totalorder %s1282_s12, %s725_s8 }
  0x42   :  { %p732_p2 = por %p731_p1, %p730_p0 }
  0x44   :  { %p733_p3 = pnand %p732_p2, %p726_p13 }
  0x46   :  { %736 = shalt.err (!%p733_p3)  }
  0x47   :  { %47 = dma.hbm_to_vmem [thread:$0]  %s35_s27, 16, %s1238_s7, [#allocation4 + $0x8] }
  0x48   :  { %s51_s15 = scalar_lea.hbm %s1555_s2, %s576_s28  ;;  %s578_s16 = sshll.u32 %s1240_s11, 4 }
  0x49   :  { %s737_s17 = scalar_lea.hbm %s51_s15, 16  ;;  %p740_p5 = scmp.lt.u32.totalorder %s51_s15, %s1555_s2 }
  0x4a   :  { %p738_p4 = scmp.ne.s32.totalorder %s51_s15, %s737_s17  ;;  %p741_p6 = scmp.lt.u32.totalorder %s1251_s20, %s737_s17 }
  0x4b   :  { %p743_p8 = scmp.lt.u32.totalorder %s737_s17, %s51_s15 }
  0x4c   :  { %p742_p7 = por %p741_p6, %p740_p5 }
  0x4e   :  { %p744_p9 = por %p743_p8, %p742_p7 }
  0x50   :  { %p745_p10 = pnand %p744_p9, %p738_p4 }
  0x52   :  { %748 = shalt.err (!%p745_p10)  }
  0x53   :  { %s749_s21 = scalar_lea.vmem %s1242_s10, 16  ;;  %p754_p12 = scmp.lt.s32.totalorder %s1242_s10, %s1234_s5 }
  0x54   :  { %p750_p11 = scmp.ne.s32.totalorder %s1242_s10, %s749_s21  ;;  %p755_p13 = scmp.lt.s32.totalorder %s1260_s24, %s749_s21 }
  0x56   :  { %p756_p0 = por %p755_p13, %p754_p12 }
  0x58   :  { %p757_p1 = pnand %p756_p0, %p750_p11 }
  0x5a   :  { %760 = shalt.err (!%p757_p1)  }
  0x5b   :  { %64 = dma.hbm_to_vmem [thread:$0]  %s51_s15, 16, %s1242_s10, [#allocation4 + $0x1] }
  0x5c   :  { %s67_s23 = scalar_lea.hbm %s1556_s3, %s578_s16  ;;  %s1176_s25 = smov [#allocation3 + $0x1]  }
  0x5d   :  { %s77_s26 = sshll.u32 %s1176_s25, 4  ;;  %s1305_s27 = sld [smem:[#allocation6 + $0x2]]  ;;  %s78_s26 = int_to_ptr.vmem [resolvable:$true] %s77_s26 }
  0x5e   :  { %s761_s28 = scalar_lea.hbm %s67_s23, 16  ;;  %p764_p3 = scmp.lt.u32.totalorder %s67_s23, %s1556_s3 }
  0x5f   :  { %p762_p2 = scmp.ne.s32.totalorder %s67_s23, %s761_s28  ;;  %p765_p4 = scmp.lt.u32.totalorder %s1273_s6, %s761_s28 }
  0x60   :  { %p767_p6 = scmp.lt.u32.totalorder %s761_s28, %s67_s23 }
  0x61   :  { %p766_p5 = por %p765_p4, %p764_p3 }
  0x63   :  { %p768_p7 = por %p767_p6, %p766_p5 }
  0x65   :  { %p769_p8 = pnand %p768_p7, %p762_p2 }
  0x67   :  { %772 = shalt.err (!%p769_p8)  }
  0x68   :  { %s773_s10 = scalar_lea.vmem %s78_s26, 16  ;;  %p778_p10 = scmp.lt.s32.totalorder %s78_s26, %s1238_s7 }
  0x69   :  { %p774_p9 = scmp.ne.s32.totalorder %s78_s26, %s773_s10  ;;  %p779_p11 = scmp.lt.s32.totalorder %s1282_s12, %s773_s10 }
  0x6b   :  { %p780_p12 = por %p779_p11, %p778_p10 }
  0x6d   :  { %p781_p13 = pnand %p780_p12, %p774_p9 }
  0x6f   :  { %784 = shalt.err (!%p781_p13)  }
  0x70   :  { %80 = dma.hbm_to_vmem [thread:$0]  %s67_s23, 16, %s78_s26, [#allocation4 + $0x9] }
  0x71   :  { %s1177_s0 = smov [#allocation2 + $0x2]   ;;  %s1313_s9 = sld [smem:[#allocation7 + $0x2]] }
  0x72   :  { %s94_s1 = sshll.u32 %s1177_s0, 4  ;;  %s1178_s8 = smov [#allocation3 + $0x2]   ;;  %s95_s1 = int_to_ptr.vmem [resolvable:$true] %s94_s1 }
  0x73   :  { %s110_s13 = sshll.u32 %s1178_s8, 4  ;;  %s1315_s14 = sld [smem:[#allocation6 + $0x3]]  ;;  %s1318_s13 = int_to_ptr.vmem [resolvable:$true] %s110_s13 }
  0x74   :  { %s580_s15 = sshll.u32 %s1305_s27, 4 }
  0x75   :  { %s84_s18 = scalar_lea.hbm %s1555_s2, %s580_s15 }
  0x76   :  { %s785_s19 = scalar_lea.hbm %s84_s18, 16  ;;  %p788_p1 = scmp.lt.u32.totalorder %s84_s18, %s1555_s2 }
  0x77   :  { %p786_p0 = scmp.ne.s32.totalorder %s84_s18, %s785_s19  ;;  %p789_p2 = scmp.lt.u32.totalorder %s1251_s20, %s785_s19 }
  0x78   :  { %p791_p4 = scmp.lt.u32.totalorder %s785_s19, %s84_s18 }
  0x79   :  { %p790_p3 = por %p789_p2, %p788_p1 }
  0x7b   :  { %p792_p5 = por %p791_p4, %p790_p3 }
  0x7d   :  { %p793_p6 = pnand %p792_p5, %p786_p0 }
  0x7f   :  { %796 = shalt.err (!%p793_p6)  }
  0x80   :  { %s797_s22 = scalar_lea.vmem %s95_s1, 16  ;;  %p802_p8 = scmp.lt.s32.totalorder %s95_s1, %s1234_s5 }
  0x81   :  { %p798_p7 = scmp.ne.s32.totalorder %s95_s1, %s797_s22  ;;  %p803_p9 = scmp.lt.s32.totalorder %s1260_s24, %s797_s22 }
  0x83   :  { %p804_p10 = por %p803_p9, %p802_p8 }
  0x85   :  { %p805_p11 = pnand %p804_p10, %p798_p7 }
  0x87   :  { %808 = shalt.err (!%p805_p11)  }
  0x88   :  { %97 = dma.hbm_to_vmem [thread:$0]  %s84_s18, 16, %s95_s1, [#allocation4 + $0x2] }
  0x89   :  { %s582_s23 = sshll.u32 %s1313_s9, 4  ;;  %s1179_s25 = smov [#allocation2 + $0x3]  }
  0x8a   :  { %s127_s26 = sshll.u32 %s1179_s25, 4  ;;  %s100_s29 = scalar_lea.hbm %s1556_s3, %s582_s23  ;;  %s1333_s26 = int_to_ptr.vmem [resolvable:$true] %s127_s26 }
  0x8b   :  { %s809_s30 = scalar_lea.hbm %s100_s29, 16  ;;  %p812_p13 = scmp.lt.u32.totalorder %s100_s29, %s1556_s3 }
  0x8c   :  { %p810_p12 = scmp.ne.s32.totalorder %s100_s29, %s809_s30  ;;  %p813_p0 = scmp.lt.u32.totalorder %s1273_s6, %s809_s30 }
  0x8d   :  { %p815_p2 = scmp.lt.u32.totalorder %s809_s30, %s100_s29 }
  0x8e   :  { %p814_p1 = por %p813_p0, %p812_p13 }
  0x90   :  { %p816_p3 = por %p815_p2, %p814_p1 }
  0x92   :  { %p817_p4 = pnand %p816_p3, %p810_p12 }
  0x94   :  { %820 = shalt.err (!%p817_p4)  }
  0x95   :  { %s821_s1 = scalar_lea.vmem %s1318_s13, 16  ;;  %p826_p6 = scmp.lt.s32.totalorder %s1318_s13, %s1238_s7 }
  0x96   :  { %p822_p5 = scmp.ne.s32.totalorder %s1318_s13, %s821_s1  ;;  %p827_p7 = scmp.lt.s32.totalorder %s1282_s12, %s821_s1 }
  0x98   :  { %p828_p8 = por %p827_p7, %p826_p6 }
  0x9a   :  { %p829_p9 = pnand %p828_p8, %p822_p5 }
  0x9c   :  { %832 = shalt.err (!%p829_p9)  }
  0x9d   :  { %113 = dma.hbm_to_vmem [thread:$0]  %s100_s29, 16, %s1318_s13, [#allocation4 + $0xa] }
  0x9e   :  { %s584_s9 = sshll.u32 %s1315_s14, 4  ;;  %s1346_s8 = sld [smem:[#allocation7 + $0x3]] }
  0x9f   :  { %s117_s17 = scalar_lea.hbm %s1555_s2, %s584_s9 }
  0xa0   :  { %s833_s18 = scalar_lea.hbm %s117_s17, 16  ;;  %p836_p11 = scmp.lt.u32.totalorder %s117_s17, %s1555_s2 }
  0xa1   :  { %p834_p10 = scmp.ne.s32.totalorder %s117_s17, %s833_s18  ;;  %p837_p12 = scmp.lt.u32.totalorder %s1251_s20, %s833_s18 }
  0xa2   :  { %p839_p0 = scmp.lt.u32.totalorder %s833_s18, %s117_s17 }
  0xa3   :  { %p838_p13 = por %p837_p12, %p836_p11 }
  0xa5   :  { %p840_p1 = por %p839_p0, %p838_p13 }
  0xa7   :  { %p841_p2 = pnand %p840_p1, %p834_p10 }
  0xa9   :  { %844 = shalt.err (!%p841_p2)  }
  0xaa   :  { %s845_s13 = scalar_lea.vmem %s1333_s26, 16  ;;  %p850_p4 = scmp.lt.s32.totalorder %s1333_s26, %s1234_s5 }
  0xab   :  { %p846_p3 = scmp.ne.s32.totalorder %s1333_s26, %s845_s13  ;;  %p851_p5 = scmp.lt.s32.totalorder %s1260_s24, %s845_s13 }
  0xad   :  { %p852_p6 = por %p851_p5, %p850_p4 }
  0xaf   :  { %p853_p7 = pnand %p852_p6, %p846_p3 }
  0xb1   :  { %856 = shalt.err (!%p853_p7)  }
  0xb2   :  { %130 = dma.hbm_to_vmem [thread:$0]  %s117_s17, 16, %s1333_s26, [#allocation4 + $0x3] }
  0xb3   :  { %s1180_s14 = smov [#allocation3 + $0x3]   ;;  %s1361_s22 = sld [smem:[#allocation6 + $0x4]] }
  0xb4   :  { %s143_s11 = sshll.u32 %s1180_s14, 4  ;;  %s1181_s23 = smov [#allocation2 + $0x4]   ;;  %s144_s11 = int_to_ptr.vmem [resolvable:$true] %s143_s11 }
  0xb5   :  { %s160_s25 = sshll.u32 %s1181_s23, 4  ;;  %s1363_s27 = sld [smem:[#allocation7 + $0x4]]  ;;  %s1366_s25 = int_to_ptr.vmem [resolvable:$true] %s160_s25 }
  0xb6   :  { %s586_s28 = sshll.u32 %s1346_s8, 4 }
  0xb7   :  { %s133_s10 = scalar_lea.hbm %s1556_s3, %s586_s28 }
  0xb8   :  { %s857_s0 = scalar_lea.hbm %s133_s10, 16  ;;  %p860_p9 = scmp.lt.u32.totalorder %s133_s10, %s1556_s3 }
  0xb9   :  { %p858_p8 = scmp.ne.s32.totalorder %s133_s10, %s857_s0  ;;  %p861_p10 = scmp.lt.u32.totalorder %s1273_s6, %s857_s0 }
  0xba   :  { %p863_p12 = scmp.lt.u32.totalorder %s857_s0, %s133_s10 }
  0xbb   :  { %p862_p11 = por %p861_p10, %p860_p9 }
  0xbd   :  { %p864_p13 = por %p863_p12, %p862_p11 }
  0xbf   :  { %p865_p0 = pnand %p864_p13, %p858_p8 }
  0xc1   :  { %868 = shalt.err (!%p865_p0)  }
  0xc2   :  { %s869_s9 = scalar_lea.vmem %s144_s11, 16  ;;  %p874_p2 = scmp.lt.s32.totalorder %s144_s11, %s1238_s7 }
  0xc3   :  { %p870_p1 = scmp.ne.s32.totalorder %s144_s11, %s869_s9  ;;  %p875_p3 = scmp.lt.s32.totalorder %s1282_s12, %s869_s9 }
  0xc5   :  { %p876_p4 = por %p875_p3, %p874_p2 }
  0xc7   :  { %p877_p5 = pnand %p876_p4, %p870_p1 }
  0xc9   :  { %880 = shalt.err (!%p877_p5)  }
  0xca   :  { %146 = dma.hbm_to_vmem [thread:$0]  %s133_s10, 16, %s144_s11, [#allocation4 + $0xb] }
  0xcb   :  { %s588_s8 = sshll.u32 %s1361_s22, 4  ;;  %s1182_s15 = smov [#allocation3 + $0x4]  }
  0xcc   :  { %s176_s16 = sshll.u32 %s1182_s15, 4  ;;  %s150_s19 = scalar_lea.hbm %s1555_s2, %s588_s8  ;;  %s1381_s16 = int_to_ptr.vmem [resolvable:$true] %s176_s16 }
  0xcd   :  { %s881_s21 = scalar_lea.hbm %s150_s19, 16  ;;  %p884_p7 = scmp.lt.u32.totalorder %s150_s19, %s1555_s2 }
  0xce   :  { %p882_p6 = scmp.ne.s32.totalorder %s150_s19, %s881_s21  ;;  %p885_p8 = scmp.lt.u32.totalorder %s1251_s20, %s881_s21 }
  0xcf   :  { %p887_p10 = scmp.lt.u32.totalorder %s881_s21, %s150_s19 }
  0xd0   :  { %p886_p9 = por %p885_p8, %p884_p7 }
  0xd2   :  { %p888_p11 = por %p887_p10, %p886_p9 }
  0xd4   :  { %p889_p12 = pnand %p888_p11, %p882_p6 }
  0xd6   :  { %892 = shalt.err (!%p889_p12)  }
  0xd7   :  { %s893_s11 = scalar_lea.vmem %s1366_s25, 16  ;;  %p898_p0 = scmp.lt.s32.totalorder %s1366_s25, %s1234_s5 }
  0xd8   :  { %p894_p13 = scmp.ne.s32.totalorder %s1366_s25, %s893_s11  ;;  %p899_p1 = scmp.lt.s32.totalorder %s1260_s24, %s893_s11 }
  0xda   :  { %p900_p2 = por %p899_p1, %p898_p0 }
  0xdc   :  { %p901_p3 = pnand %p900_p2, %p894_p13 }
  0xde   :  { %904 = shalt.err (!%p901_p3)  }
  0xdf   :  { %163 = dma.hbm_to_vmem [thread:$0]  %s150_s19, 16, %s1366_s25, [#allocation4 + $0x4] }
  0xe0   :  { %s590_s22 = sshll.u32 %s1363_s27, 4  ;;  %s1394_s23 = sld [smem:[#allocation6 + $0x5]] }
  0xe1   :  { %s166_s30 = scalar_lea.hbm %s1556_s3, %s590_s22 }
  0xe2   :  { %s905_s10 = scalar_lea.hbm %s166_s30, 16  ;;  %p908_p5 = scmp.lt.u32.totalorder %s166_s30, %s1556_s3 }
  0xe3   :  { %p906_p4 = scmp.ne.s32.totalorder %s166_s30, %s905_s10  ;;  %p909_p6 = scmp.lt.u32.totalorder %s1273_s6, %s905_s10 }
  0xe4   :  { %p911_p8 = scmp.lt.u32.totalorder %s905_s10, %s166_s30 }
  0xe5   :  { %p910_p7 = por %p909_p6, %p908_p5 }
  0xe7   :  { %p912_p9 = por %p911_p8, %p910_p7 }
  0xe9   :  { %p913_p10 = pnand %p912_p9, %p906_p4 }
  0xeb   :  { %916 = shalt.err (!%p913_p10)  }
  0xec   :  { %s917_s25 = scalar_lea.vmem %s1381_s16, 16  ;;  %p922_p12 = scmp.lt.s32.totalorder %s1381_s16, %s1238_s7 }
  0xed   :  { %p918_p11 = scmp.ne.s32.totalorder %s1381_s16, %s917_s25  ;;  %p923_p13 = scmp.lt.s32.totalorder %s1282_s12, %s917_s25 }
  0xef   :  { %p924_p0 = por %p923_p13, %p922_p12 }
  0xf1   :  { %p925_p1 = pnand %p924_p0, %p918_p11 }
  0xf3   :  { %928 = shalt.err (!%p925_p1)  }
  0xf4   :  { %179 = dma.hbm_to_vmem [thread:$0]  %s166_s30, 16, %s1381_s16, [#allocation4 + $0xc] }
  0xf5   :  { %s1183_s27 = smov [#allocation2 + $0x5]   ;;  %s1409_s9 = sld [smem:[#allocation7 + $0x5]] }
  0xf6   :  { %s193_s26 = sshll.u32 %s1183_s27, 4  ;;  %s1184_s8 = smov [#allocation3 + $0x5]   ;;  %s194_s26 = int_to_ptr.vmem [resolvable:$true] %s193_s26 }
  0xf7   :  { %s209_s15 = sshll.u32 %s1184_s8, 4  ;;  %s1411_s17 = sld [smem:[#allocation6 + $0x6]]  ;;  %s1414_s15 = int_to_ptr.vmem [resolvable:$true] %s209_s15 }
  0xf8   :  { %s592_s18 = sshll.u32 %s1394_s23, 4 }
  0xf9   :  { %s183_s13 = scalar_lea.hbm %s1555_s2, %s592_s18 }
  0xfa   :  { %s929_s14 = scalar_lea.hbm %s183_s13, 16  ;;  %p932_p3 = scmp.lt.u32.totalorder %s183_s13, %s1555_s2 }
  0xfb   :  { %p930_p2 = scmp.ne.s32.totalorder %s183_s13, %s929_s14  ;;  %p933_p4 = scmp.lt.u32.totalorder %s1251_s20, %s929_s14 }
  0xfc   :  { %p935_p6 = scmp.lt.u32.totalorder %s929_s14, %s183_s13 }
  0xfd   :  { %p934_p5 = por %p933_p4, %p932_p3 }
  0xff   :  { %p936_p7 = por %p935_p6, %p934_p5 }
 0x101   :  { %p937_p8 = pnand %p936_p7, %p930_p2 }
 0x103   :  { %940 = shalt.err (!%p937_p8)  }
 0x104   :  { %s941_s22 = scalar_lea.vmem %s194_s26, 16  ;;  %p946_p10 = scmp.lt.s32.totalorder %s194_s26, %s1234_s5 }
 0x105   :  { %p942_p9 = scmp.ne.s32.totalorder %s194_s26, %s941_s22  ;;  %p947_p11 = scmp.lt.s32.totalorder %s1260_s24, %s941_s22 }
 0x107   :  { %p948_p12 = por %p947_p11, %p946_p10 }
 0x109   :  { %p949_p13 = pnand %p948_p12, %p942_p9 }
 0x10b   :  { %952 = shalt.err (!%p949_p13)  }
 0x10c   :  { %196 = dma.hbm_to_vmem [thread:$0]  %s183_s13, 16, %s194_s26, [#allocation4 + $0x5] }
 0x10d   :  { %s594_s23 = sshll.u32 %s1409_s9, 4  ;;  %s1185_s28 = smov [#allocation2 + $0x6]  }
 0x10e   :  { %s226_s29 = sshll.u32 %s1185_s28, 4  ;;  %s199_s0 = scalar_lea.hbm %s1556_s3, %s594_s23  ;;  %s1429_s29 = int_to_ptr.vmem [resolvable:$true] %s226_s29 }
 0x10f   :  { %s953_s1 = scalar_lea.hbm %s199_s0, 16  ;;  %p956_p1 = scmp.lt.u32.totalorder %s199_s0, %s1556_s3 }
 0x110   :  { %p954_p0 = scmp.ne.s32.totalorder %s199_s0, %s953_s1  ;;  %p957_p2 = scmp.lt.u32.totalorder %s1273_s6, %s953_s1 }
 0x111   :  { %p959_p4 = scmp.lt.u32.totalorder %s953_s1, %s199_s0 }
 0x112   :  { %p958_p3 = por %p957_p2, %p956_p1 }
 0x114   :  { %p960_p5 = por %p959_p4, %p958_p3 }
 0x116   :  { %p961_p6 = pnand %p960_p5, %p954_p0 }
 0x118   :  { %964 = shalt.err (!%p961_p6)  }
 0x119   :  { %s965_s26 = scalar_lea.vmem %s1414_s15, 16  ;;  %p970_p8 = scmp.lt.s32.totalorder %s1414_s15, %s1238_s7 }
 0x11a   :  { %p966_p7 = scmp.ne.s32.totalorder %s1414_s15, %s965_s26  ;;  %p971_p9 = scmp.lt.s32.totalorder %s1282_s12, %s965_s26 }
 0x11c   :  { %p972_p10 = por %p971_p9, %p970_p8 }
 0x11e   :  { %p973_p11 = pnand %p972_p10, %p966_p7 }
 0x120   :  { %976 = shalt.err (!%p973_p11)  }
 0x121   :  { %212 = dma.hbm_to_vmem [thread:$0]  %s199_s0, 16, %s1414_s15, [#allocation4 + $0xd] }
 0x122   :  { %s596_s9 = sshll.u32 %s1411_s17, 4  ;;  %s1442_s8 = sld [smem:[#allocation7 + $0x6]] }
 0x123   :  { %s216_s21 = scalar_lea.hbm %s1555_s2, %s596_s9 }
 0x124   :  { %s977_s13 = scalar_lea.hbm %s216_s21, 16  ;;  %p980_p13 = scmp.lt.u32.totalorder %s216_s21, %s1555_s2 }
 0x125   :  { %p978_p12 = scmp.ne.s32.totalorder %s216_s21, %s977_s13  ;;  %p981_p0 = scmp.lt.u32.totalorder %s1251_s20, %s977_s13 }
 0x126   :  { %p983_p2 = scmp.lt.u32.totalorder %s977_s13, %s216_s21 }
 0x127   :  { %p982_p1 = por %p981_p0, %p980_p13 }
 0x129   :  { %p984_p3 = por %p983_p2, %p982_p1 }
 0x12b   :  { %p985_p4 = pnand %p984_p3, %p978_p12 }
 0x12d   :  { %988 = shalt.err (!%p985_p4)  }
 0x12e   :  { %s989_s15 = scalar_lea.vmem %s1429_s29, 16  ;;  %p994_p6 = scmp.lt.s32.totalorder %s1429_s29, %s1234_s5 }
 0x12f   :  { %p990_p5 = scmp.ne.s32.totalorder %s1429_s29, %s989_s15  ;;  %p995_p7 = scmp.lt.s32.totalorder %s1260_s24, %s989_s15 }
 0x131   :  { %p996_p8 = por %p995_p7, %p994_p6 }
 0x133   :  { %p997_p9 = pnand %p996_p8, %p990_p5 }
 0x135   :  { %1000 = shalt.err (!%p997_p9)  }
 0x136   :  { %229 = dma.hbm_to_vmem [thread:$0]  %s216_s21, 16, %s1429_s29, [#allocation4 + $0x6] }
 0x137   :  { %s1186_s17 = smov [#allocation3 + $0x6]   ;;  %s1457_s22 = sld [smem:[#allocation6 + $0x7]] }
 0x138   :  { %s242_s16 = sshll.u32 %s1186_s17, 4  ;;  %s1187_s23 = smov [#allocation2 + $0x7]   ;;  %s243_s16 = int_to_ptr.vmem [resolvable:$true] %s242_s16 }
 0x139   :  { %s259_s28 = sshll.u32 %s1187_s23, 4  ;;  %s1459_s30 = sld [smem:[#allocation7 + $0x7]]  ;;  %s1462_s28 = int_to_ptr.vmem [resolvable:$true] %s259_s28 }
 0x13a   :  { %s598_s10 = sshll.u32 %s1442_s8, 4 }
 0x13b   :  { %s232_s25 = scalar_lea.hbm %s1556_s3, %s598_s10 }
 0x13c   :  { %s1001_s27 = scalar_lea.hbm %s232_s25, 16  ;;  %p1004_p11 = scmp.lt.u32.totalorder %s232_s25, %s1556_s3 }
 0x13d   :  { %p1002_p10 = scmp.ne.s32.totalorder %s232_s25, %s1001_s27  ;;  %p1005_p12 = scmp.lt.u32.totalorder %s1273_s6, %s1001_s27 }
 0x13e   :  { %p1007_p0 = scmp.lt.u32.totalorder %s1001_s27, %s232_s25 }
 0x13f   :  { %p1006_p13 = por %p1005_p12, %p1004_p11 }
 0x141   :  { %p1008_p1 = por %p1007_p0, %p1006_p13 }
 0x143   :  { %p1009_p2 = pnand %p1008_p1, %p1002_p10 }
 0x145   :  { %1012 = shalt.err (!%p1009_p2)  }
 0x146   :  { %s1013_s9 = scalar_lea.vmem %s243_s16, 16  ;;  %p1018_p4 = scmp.lt.s32.totalorder %s243_s16, %s1238_s7 }
 0x147   :  { %p1014_p3 = scmp.ne.s32.totalorder %s243_s16, %s1013_s9  ;;  %p1019_p5 = scmp.lt.s32.totalorder %s1282_s12, %s1013_s9 }
 0x149   :  { %p1020_p6 = por %p1019_p5, %p1018_p4 }
 0x14b   :  { %p1021_p7 = pnand %p1020_p6, %p1014_p3 }
 0x14d   :  { %1024 = shalt.err (!%p1021_p7)  }
 0x14e   :  { %245 = dma.hbm_to_vmem [thread:$0]  %s232_s25, 16, %s243_s16, [#allocation4 + $0xe] }
 0x14f   :  { %s600_s8 = sshll.u32 %s1457_s22, 4  ;;  %s1188_s18 = smov [#allocation3 + $0x7]  }
 0x150   :  { %s275_s19 = sshll.u32 %s1188_s18, 4  ;;  %s249_s14 = scalar_lea.hbm %s1555_s2, %s600_s8  ;;  %s1477_s19 = int_to_ptr.vmem [resolvable:$true] %s275_s19 }
 0x151   :  { %s1025_s11 = scalar_lea.hbm %s249_s14, 16  ;;  %p1028_p9 = scmp.lt.u32.totalorder %s249_s14, %s1555_s2 }
 0x152   :  { %p1026_p8 = scmp.ne.s32.totalorder %s249_s14, %s1025_s11  ;;  %p1029_p10 = scmp.lt.u32.totalorder %s1251_s20, %s1025_s11 }
 0x153   :  { %p1031_p12 = scmp.lt.u32.totalorder %s1025_s11, %s249_s14 }
 0x154   :  { %p1030_p11 = por %p1029_p10, %p1028_p9 }
 0x156   :  { %p1032_p13 = por %p1031_p12, %p1030_p11 }
 0x158   :  { %p1033_p0 = pnand %p1032_p13, %p1026_p8 }
 0x15a   :  { %1036 = shalt.err (!%p1033_p0)  }
 0x15b   :  { %s1037_s16 = scalar_lea.vmem %s1462_s28, 16  ;;  %p1042_p2 = scmp.lt.s32.totalorder %s1462_s28, %s1234_s5 }
 0x15c   :  { %p1038_p1 = scmp.ne.s32.totalorder %s1462_s28, %s1037_s16  ;;  %p1043_p3 = scmp.lt.s32.totalorder %s1260_s24, %s1037_s16 }
 0x15e   :  { %p1044_p4 = por %p1043_p3, %p1042_p2 }
 0x160   :  { %p1045_p5 = pnand %p1044_p4, %p1038_p1 }
 0x162   :  { %1048 = shalt.err (!%p1045_p5)  }
 0x163   :  { %262 = dma.hbm_to_vmem [thread:$0]  %s249_s14, 16, %s1462_s28, [#allocation4 + $0x7] }
 0x164   :  { %s602_s22 = sshll.u32 %s1459_s30, 4 }
 0x165   :  { %s265_s0 = scalar_lea.hbm %s1556_s3, %s602_s22 }
 0x166   :  { %s1049_s1 = scalar_lea.hbm %s265_s0, 16  ;;  %p1052_p7 = scmp.lt.u32.totalorder %s265_s0, %s1556_s3 }
 0x167   :  { %p1050_p6 = scmp.ne.s32.totalorder %s265_s0, %s1049_s1  ;;  %p1053_p8 = scmp.lt.u32.totalorder %s1273_s6, %s1049_s1 }
 0x168   :  { %p1055_p10 = scmp.lt.u32.totalorder %s1049_s1, %s265_s0 }
 0x169   :  { %p1054_p9 = por %p1053_p8, %p1052_p7 }
 0x16b   :  { %p1056_p11 = por %p1055_p10, %p1054_p9 }
 0x16d   :  { %p1057_p12 = pnand %p1056_p11, %p1050_p6 }
 0x16f   :  { %1060 = shalt.err (!%p1057_p12)  }
 0x170   :  { %s1061_s28 = scalar_lea.vmem %s1477_s19, 16  ;;  %p1066_p0 = scmp.lt.s32.totalorder %s1477_s19, %s1238_s7 }
 0x171   :  { %p1062_p13 = scmp.ne.s32.totalorder %s1477_s19, %s1061_s28  ;;  %p1067_p1 = scmp.lt.s32.totalorder %s1282_s12, %s1061_s28 }
 0x173   :  { %p1068_p2 = por %p1067_p1, %p1066_p0 }
 0x175   :  { %p1069_p3 = pnand %p1068_p2, %p1062_p13 }
 0x177   :  { %1072 = shalt.err (!%p1069_p3)  }
 0x178   :  { %278 = dma.hbm_to_vmem [thread:$0]  %s265_s0, 16, %s1477_s19, [#allocation4 + $0xf] }
 0x179   :  { %s1503_s30 = smov 0  }
 0x17a LB: > { %p285_p4 = scmp.lt.s32.totalorder %s1165_s30, 0  ;;  %s286_s26 = ssub.s32 0, %s1165_s30  ;;  %s1165_s30 = sphi %s1503_s30, %s284_s30  }
 0x17b   : > { %s603_s29 = smin.u32 %s1165_s30, %s286_s26 }
 0x17c   : > { %s288_s9 = sand.u32 7, %s603_s29  }
 0x17d   : > { %s289_s8 = ssub.s32 0, %s288_s9 }
 0x17e   : > { %s1560_s8 = smov (!%p285_p4, %s289_s8), %s288_s9 }
 0x17f   : > { %p605_p5 = scmp.lt.s32.totalorder %s1560_s8, 0  ;;  %s295_s18 = sadd.s32 8, %s1560_s8 }
 0x181   : > { %s1562_s18 = smov (!%p605_p5, %s295_s18), %s1560_s8 }
 0x182   : > { %s297_s19 = scalar_lea.sflag [#allocation4], %s1562_s18 }
 0x183   : > { %1153 = dma.done.wait %s297_s19, 16 }
 0x184   : > { %1154 = vsyncadd %s297_s19, 4294967280  ;;  %s548_s21 = scalar_lea.sflag %s297_s19, 8 [#allocation4] }
 0x185   : > { %1155 = dma.done.wait %s548_s21, 16 }
 0x186   : > { %1156 = vsyncadd %s548_s21, 4294967280  ;;  %s305_s13 = sadd.s32 8, %s1165_s30  ;;  %s551_s16 = scalar_lea.vmem [#allocation2], %s1165_s30 }
 0x187   : > { %s319_s14 = sld [smem:[#allocation6 + %s305_s13]]  ;;  %p306_p6 = scmp.lt.s32.totalorder %s305_s13, 0 }
 0x188   : > { %s335_s11 = sld [smem:[#allocation7 + %s305_s13]]  ;;  %s307_s15 = ssub.s32 0, %s305_s13 }
 0x189   : > { %s606_s17 = smin.u32 %s307_s15, %s305_s13  ;;  %s552_s22 = scalar_lea.vmem %s551_s16, 8 [#allocation2] }
 0x18a   : > { %s309_s23 = sand.u32 7, %s606_s17   ;;  %s331_s10 = sshll.u32 %s552_s22, 4  ;;  %s332_s10 = int_to_ptr.vmem [resolvable:$true] %s331_s10 }
 0x18b   : > { %s310_s0 = ssub.s32 0, %s309_s23  ;;  %s556_s19 = scalar_lea.vmem [#allocation3], %s1165_s30 }
 0x18c   : > { %s1564_s0 = smov (!%p306_p6, %s310_s0), %s309_s23  ;;  %s557_s21 = scalar_lea.vmem %s556_s19, 8 [#allocation3] }
 0x18d   : > { %s609_s1 = sshll.u32 %s319_s14, 4  ;;  %p608_p7 = scmp.lt.s32.totalorder %s1564_s0, 0 }
 0x18e   : > { %s610_s25 = sshll.u32 %s335_s11, 4  ;;  %s316_s27 = sadd.s32 8, %s1564_s0 }
 0x18f   : > { %s321_s29 = scalar_lea.hbm %s1555_s2, %s609_s1  ;;  %s1566_s27 = smov (!%p608_p7, %s316_s27), %s1564_s0 }
 0x190   : > { %s1519_s18 = scalar_lea.hbm %s1556_s3, %s610_s25  ;;  %s323_s13 = scalar_lea.sflag [#allocation4], %s1566_s27 }
 0x191   : > { %s1073_s15 = scalar_lea.hbm %s321_s29, 16  ;;  %p1076_p9 = scmp.lt.u32.totalorder %s321_s29, %s1555_s2 }
 0x192   : > { %p1074_p8 = scmp.ne.s32.totalorder %s321_s29, %s1073_s15  ;;  %p1077_p10 = scmp.lt.u32.totalorder %s1251_s20, %s1073_s15 }
 0x193   : > { %p1079_p12 = scmp.lt.u32.totalorder %s1073_s15, %s321_s29 }
 0x194   : > { %p1078_p11 = por %p1077_p10, %p1076_p9 }
 0x196   : > { %p1080_p13 = por %p1079_p12, %p1078_p11 }
 0x198   : > { %p1081_p0 = pnand %p1080_p13, %p1074_p8 }
 0x19a   : > { %1084 = shalt.err (!%p1081_p0)  }
 0x19b   : > { %s1085_s11 = scalar_lea.vmem %s332_s10, 16  ;;  %p1090_p2 = scmp.lt.s32.totalorder %s332_s10, %s1234_s5 }
 0x19c   : > { %p1086_p1 = scmp.ne.s32.totalorder %s332_s10, %s1085_s11  ;;  %p1091_p3 = scmp.lt.s32.totalorder %s1260_s24, %s1085_s11 }
 0x19e   : > { %p1092_p4 = por %p1091_p3, %p1090_p2 }
 0x1a0   : > { %p1093_p5 = pnand %p1092_p4, %p1086_p1 }
 0x1a2   : > { %1096 = shalt.err (!%p1093_p5)  }
 0x1a3   : > { %334 = dma.hbm_to_vmem [thread:$0]  %s321_s29, 16, %s332_s10, %s323_s13 }
 0x1a4   : > { %s559_s16 = scalar_lea.sflag %s323_s13, 8 [#allocation4]  ;;  %s348_s22 = sshll.u32 %s557_s21, 4  ;;  %s349_s22 = int_to_ptr.vmem [resolvable:$true] %s348_s22 }
 0x1a5   : > { %s1097_s23 = scalar_lea.hbm %s1519_s18, 16  ;;  %p1100_p7 = scmp.lt.u32.totalorder %s1519_s18, %s1556_s3 }
 0x1a6   : > { %p1098_p6 = scmp.ne.s32.totalorder %s1519_s18, %s1097_s23  ;;  %p1101_p8 = scmp.lt.u32.totalorder %s1273_s6, %s1097_s23 }
 0x1a7   : > { %p1103_p10 = scmp.lt.u32.totalorder %s1097_s23, %s1519_s18 }
 0x1a8   : > { %p1102_p9 = por %p1101_p8, %p1100_p7 }
 0x1aa   : > { %p1104_p11 = por %p1103_p10, %p1102_p9 }
 0x1ac   : > { %p1105_p12 = pnand %p1104_p11, %p1098_p6 }
 0x1ae   : > { %1108 = shalt.err (!%p1105_p12)  }
 0x1af   : > { %s1109_s10 = scalar_lea.vmem %s349_s22, 16  ;;  %p1114_p0 = scmp.lt.s32.totalorder %s349_s22, %s1238_s7 }
 0x1b0   : > { %p1110_p13 = scmp.ne.s32.totalorder %s349_s22, %s1109_s10  ;;  %p1115_p1 = scmp.lt.s32.totalorder %s1282_s12, %s1109_s10 }
 0x1b2   : > { %p1116_p2 = por %p1115_p1, %p1114_p0 }
 0x1b4   : > { %p1117_p3 = pnand %p1116_p2, %p1110_p13 }
 0x1b6   : > { %1120 = shalt.err (!%p1117_p3)  }
 0x1b7   : > { %351 = dma.hbm_to_vmem [thread:$0]  %s1519_s18, 16, %s349_s22, %s559_s16 }
 0x1b8   : > { %s284_s30 = sadd.s32 1, %s1165_s30  }
 0x1b9   : > { %p281_p4 = scmp.ge.s32.totalorder %s284_s30, 8  }
 0x1ba   :  { %s1167_s25 = smov (%p281_p4), 0  }
 0x1bb   :  { %283 = sbr.rel (!%p281_p4) target bundleno = 378 (0x17a), region = 176 }
 0x1c2 LB: > { %s358_s27 = sadd.s32 8, %s1169_s25  ;;  %s1169_s25 = sphi %s1167_s25, %s357_s25  }
 0x1c3   : > { %p359_p5 = scmp.lt.s32.totalorder %s358_s27, 0  ;;  %s360_s28 = ssub.s32 0, %s358_s27 }
 0x1c4   : > { %s611_s26 = smin.u32 %s360_s28, %s358_s27 }
 0x1c5   : > { %s362_s29 = sand.u32 7, %s611_s26  }
 0x1c6   : > { %s363_s9 = ssub.s32 0, %s362_s29 }
 0x1c7   : > { %s1568_s9 = smov (!%p359_p5, %s363_s9), %s362_s29 }
 0x1c8   : > { %p613_p6 = scmp.lt.s32.totalorder %s1568_s9, 0  ;;  %s369_s8 = sadd.s32 8, %s1568_s9 }
 0x1ca   : > { %s1570_s8 = smov (!%p613_p6, %s369_s8), %s1568_s9 }
 0x1cb   : > { %s371_s18 = scalar_lea.sflag [#allocation4], %s1570_s8 }
 0x1cc   : > { %1157 = dma.done.wait %s371_s18, 16 }
 0x1cd   : > { %1158 = vsyncadd %s371_s18, 4294967280  ;;  %s562_s19 = scalar_lea.sflag %s371_s18, 8 [#allocation4] }
 0x1ce   : > { %1159 = dma.done.wait %s562_s19, 16 }
 0x1cf   : > { %1160 = vsyncadd %s562_s19, 4294967280  ;;  %s357_s25 = sadd.s32 1, %s1169_s25  }
 0x1d0   : > { %p354_p7 = scmp.ge.s32.totalorder %s357_s25, 8  }
 0x1d1   :  { %v379_v0 = vld [vmem:[#allocation2] sm:$0xff] (%p354_p7)  ;;  %v381_v1 = vld [vmem:[#allocation3] sm:$0xff] (%p354_p7)  ;;  %v380_v2 = vld [vmem:[#allocation2 + $0x8] sm:$0xff] (%p354_p7)  ;;  %s1189_s2 = smov (%p354_p7), [#allocation8]  }
 0x1d2   :  { %356 = sbr.rel (!%p354_p7) target bundleno = 450 (0x1c2), region = 187  ;;  %v383_v3 = vadd.f32 (%p354_p7), %v381_v1, %v379_v0  ;;  %v382_v4 = vld [vmem:[#allocation3 + $0x8] sm:$0xff] (%p354_p7)  ;;  %s392_s3 = sshll.u32 (%p354_p7), %s1189_s2, 4  ;;  %s393_s3 = int_to_ptr.vmem [resolvable:$true] %s392_s3 }
 0x1d3   :  { %v384_v5 = vadd.f32 (%p354_p7), %v382_v4, %v380_v2  ;;  %s1121_s5 = scalar_lea.vmem (%p354_p7), %s393_s3, 256  ;;  %p1126_p9 = scmp.lt.s32.totalorder (%p354_p7), %s393_s3, %s393_s3 }
 0x1d4   :  { %385 = vst [vmem:[#allocation8] sm:$0xff] (%p354_p7), %v383_v3  ;;  %p1122_p8 = scmp.ne.s32.totalorder (%p354_p7), %s393_s3, %s1121_s5  ;;  %p1127_p10 = scmp.lt.s32.totalorder (%p354_p7), %s1121_s5, %s1121_s5 }
 0x1d5   :  { %386 = vst [vmem:[#allocation8 + $0x8] sm:$0xff] (%p354_p7), %v384_v5 }
 0x1d6   :  { %p1128_p11 = por (%p354_p7), %p1127_p10, %p1126_p9 }
 0x1d8   :  { %p1129_p12 = pnand (%p354_p7), %p1128_p11, %p1122_p8 }
 0x1da   :  { %1132 = shalt.err (!%p1129_p12)
}
 0x1db   :  { %s1133_s24 = scalar_lea.hbm %s1557_s4, 256 }
 0x1dc   :  { %p1134_p13 = scmp.ne.s32.totalorder %s1557_s4, %s1133_s24  ;;  %p1137_p0 = scmp.lt.u32.totalorder %s1133_s24, %s1557_s4 }
 0x1de   :  { %p1139_p1 = pnand %p1137_p0, %p1134_p13 }
 0x1e0   :  { %1142 = shalt.err (!%p1139_p1)
}
 0x1e1   :  { %s1190_s13 = smov 128   ;;  %s1191_s15 = smov 8  }
 0x1e2   :  { %398 = dma.vmem_to_hbm [thread:$0]  %s393_s3, 256, %s1557_s4, [#allocation9], %s1190_s13, %s1190_s13, %s1191_s15  }
 0x1e3   :  { %1161 = dma.done.wait [#allocation9], 256  }
 0x1e4   :  { %1162 = vsyncadd [#allocation9], 4294967040 }
 0x1e5   :  { %402 = vsyncpa [#allocation9], 1 }
 0x1e6   :  { %403 = vsyncmov [#allocation4] }
 0x1e9   :  { %s404_s11 = vpop.sfrf %403 }
 0x1ea   :  { %p614_p2 = scmp.ne.s32.totalorder %s404_s11, 0 }
 0x1ec   :  { %408 = shalt.err (%p614_p2)  }
 0x1ed   :  { %410 = vsyncmov [#allocation4 + $0x1] }
 0x1f0   :  { %s411_s16 = vpop.sfrf %410 }
 0x1f1   :  { %p615_p3 = scmp.ne.s32.totalorder %s411_s16, 0 }
 0x1f3   :  { %415 = shalt.err (%p615_p3)  }
 0x1f4   :  { %417 = vsyncmov [#allocation4 + $0x2] }
 0x1f7   :  { %s418_s22 = vpop.sfrf %417 }
 0x1f8   :  { %p616_p4 = scmp.ne.s32.totalorder %s418_s22, 0 }
 0x1fa   :  { %422 = shalt.err (%p616_p4)  }
 0x1fb   :  { %424 = vsyncmov [#allocation4 + $0x3] }
 0x1fe   :  { %s425_s23 = vpop.sfrf %424 }
 0x1ff   :  { %p617_p5 = scmp.ne.s32.totalorder %s425_s23, 0 }
 0x201   :  { %429 = shalt.err (%p617_p5)  }
 0x202   :  { %431 = vsyncmov [#allocation4 + $0x4] }
 0x205   :  { %s432_s4 = vpop.sfrf %431 }
 0x206   :  { %p618_p6 = scmp.ne.s32.totalorder %s432_s4, 0 }
 0x208   :  { %436 = shalt.err (%p618_p6)  }
 0x209   :  { %438 = vsyncmov [#allocation4 + $0x5] }
 0x20c   :  { %s439_s0 = vpop.sfrf %438 }
 0x20d   :  { %p619_p7 = scmp.ne.s32.totalorder %s439_s0, 0 }
 0x20f   :  { %443 = shalt.err (%p619_p7)  }
 0x210   :  { %445 = vsyncmov [#allocation4 + $0x6] }
 0x213   :  { %s446_s1 = vpop.sfrf %445 }
 0x214   :  { %p620_p8 = scmp.ne.s32.totalorder %s446_s1, 0 }
 0x216   :  { %450 = shalt.err (%p620_p8)  }
 0x217   :  { %452 = vsyncmov [#allocation4 + $0x7] }
 0x21a   :  { %s453_s10 = vpop.sfrf %452 }
 0x21b   :  { %p621_p9 = scmp.ne.s32.totalorder %s453_s10, 0 }
 0x21d   :  { %457 = shalt.err (%p621_p9)  }
 0x21e   :  { %459 = vsyncmov [#allocation4 + $0x8] }
 0x221   :  { %s460_s25 = vpop.sfrf %459 }
 0x222   :  { %p622_p10 = scmp.ne.s32.totalorder %s460_s25, 0 }
 0x224   :  { %464 = shalt.err (%p622_p10)  }
 0x225   :  { %466 = vsyncmov [#allocation4 + $0x9] }
 0x228   :  { %s467_s27 = vpop.sfrf %466 }
 0x229   :  { %p623_p11 = scmp.ne.s32.totalorder %s467_s27, 0 }
 0x22b   :  { %471 = shalt.err (%p623_p11)  }
 0x22c   :  { %473 = vsyncmov [#allocation4 + $0xa] }
 0x22f   :  { %s474_s28 = vpop.sfrf %473 }
 0x230   :  { %p624_p12 = scmp.ne.s32.totalorder %s474_s28, 0 }
 0x232   :  { %478 = shalt.err (%p624_p12)  }
 0x233   :  { %480 = vsyncmov [#allocation4 + $0xb] }
 0x236   :  { %s481_s26 = vpop.sfrf %480 }
 0x237   :  { %p625_p13 = scmp.ne.s32.totalorder %s481_s26, 0 }
 0x239   :  { %485 = shalt.err (%p625_p13)  }
 0x23a   :  { %487 = vsyncmov [#allocation4 + $0xc] }
 0x23d   :  { %s488_s29 = vpop.sfrf %487 }
 0x23e   :  { %p626_p0 = scmp.ne.s32.totalorder %s488_s29, 0 }
 0x240   :  { %492 = shalt.err (%p626_p0)  }
 0x241   :  { %494 = vsyncmov [#allocation4 + $0xd] }
 0x244   :  { %s495_s9 = vpop.sfrf %494 }
 0x245   :  { %p627_p1 = scmp.ne.s32.totalorder %s495_s9, 0 }
 0x247   :  { %499 = shalt.err (%p627_p1)  }
 0x248   :  { %501 = vsyncmov [#allocation4 + $0xe] }
 0x24b   :  { %s502_s8 = vpop.sfrf %501 }
 0x24c   :  { %p628_p2 = scmp.ne.s32.totalorder %s502_s8, 0 }
 0x24e   :  { %506 = shalt.err (%p628_p2)  }
 0x24f   :  { %508 = vsyncmov [#allocation4 + $0xf] }
 0x252   :  { %s509_s18 = vpop.sfrf %508 }
 0x253   :  { %p629_p3 = scmp.ne.s32.totalorder %s509_s18, 0 }
 0x255   :  { %513 = shalt.err (%p629_p3)  }

</bundles_post_ra>
